<compile_context>
chip_gen: v7x
topology: tpu7x:2x2x1
jax: 0.10.0
libtpu: 0.0.40
codegen_flags: <defaults>
</compile_context>

<pallas_src>
import jax
import jax.numpy as jnp
from jax.experimental import pallas as pl
from jax.experimental.pallas import tpu as pltpu

EPS = 1e-5
LANE = 128
SLAB_COLS = 256  # widest layer width; every slab segment is padded to this.


def _round_up(n, m):
    return ((n + m - 1) // m) * m


def _layer_dims(input_size, output_size):
    # (fan_in, fan_out) for the 7 Linear layers, in forward order.
    return [(input_size, 256), (256, 256), (256, 256), (256, 256),
            (256, 256), (256, 128), (128, output_size)]


# --------------------------------------------------------------------------
# Parameter construction / packing
# --------------------------------------------------------------------------
def init_params(key, input_size, output_size):
    """PyTorch-style uniform fan-in init.

    Returns [w0,b0,g0,beta0, w1,b1,g1,beta1, ..., w6,b6] with weights stored
    as (in, out) so the kernel computes x @ W + b (== x @ W_pt.T + b).
    """
    params = []
    for i, (fan_in, fan_out) in enumerate(_layer_dims(input_size, output_size)):
        key, kw, kb, kg, kbe = jax.random.split(key, 5)
        bound = 1.0 / (fan_in ** 0.5)
        w = jax.random.uniform(kw, (fan_in, fan_out), jnp.float32, -bound, bound)
        b = jax.random.uniform(kb, (1, fan_out), jnp.float32, -bound, bound)
        params.extend([w, b])
        if i < 6:  # batch-norm affine params follow the first 6 linears
            gamma = 1.0 + 0.1 * jax.random.normal(kg, (1, fan_out), jnp.float32)
            beta = 0.1 * jax.random.normal(kbe, (1, fan_out), jnp.float32)
            params.extend([gamma, beta])
    return params


def pack_params(params, input_size, output_size):
    """Pack all weights into one bf16 slab and all vectors into one f32 slab."""
    dims = _layer_dims(input_size, output_size)
    # bf16 sublane tile is 16 rows -> keep every segment row-offset 16-aligned.
    k0_rows = _round_up(max(input_size, 1), 16)
    row_sizes = (k0_rows, 256, 256, 256, 256, 256, 128)
    n_outs = (256, 256, 256, 256, 256, 128, 128)

    row_offsets, off = [], 0
    for r in row_sizes:
        row_offsets.append(off)
        off += r
    total_rows = off

    w_slab = jnp.zeros((total_rows, SLAB_COLS), jnp.bfloat16)
    n_vec_rows = _round_up(3 * 6 + 1, 8)  # b,g,beta per BN layer + b6 -> 24
    v_slab = jnp.zeros((n_vec_rows, SLAB_COLS), jnp.float32)

    idx = 0
    for layer, (fan_in, fan_out) in enumerate(dims):
        w, b = params[idx], params[idx + 1]
        idx += 2
        r0 = row_offsets[layer]
        w_slab = w_slab.at[r0:r0 + fan_in, :fan_out].set(w.astype(jnp.bfloat16))
        vrow = 3 * layer if layer < 6 else 18
        v_slab = v_slab.at[vrow, :fan_out].set(b.reshape(-1))
        if layer < 6:
            g, be = params[idx], params[idx + 1]
            idx += 2
            v_slab = v_slab.at[vrow + 1, :fan_out].set(g.reshape(-1))
            v_slab = v_slab.at[vrow + 2, :fan_out].set(be.reshape(-1))

    meta = dict(k0_rows=k0_rows, row_offsets=tuple(row_offsets),
                row_sizes=row_sizes, n_outs=n_outs,
                input_size=input_size, output_size=output_size)
    return w_slab, v_slab, meta


# --------------------------------------------------------------------------
# Kernel
# --------------------------------------------------------------------------
def _make_kernel(batch, row_offsets, row_sizes, n_outs):
    inv_b = 1.0 / float(batch)

    def kernel(x_ref, w_ref, v_ref, out_ref):
        # bf16 at every dot boundary; f32 accumulation / BN statistics.
        h = x_ref[...].astype(jnp.bfloat16)                     # (B, k0)
        for layer in range(6):
            r0, kin, nout = row_offsets[layer], row_sizes[layer], n_outs[layer]
            vr = 3 * layer
            b = v_ref[vr:vr + 1, 0:nout]
            g = v_ref[vr + 1:vr + 2, 0:nout]
            be = v_ref[vr + 2:vr + 3, 0:nout]

            # Native bf16 x bf16 MXU matmul, f32 accumulation.
            z = jnp.dot(h, w_ref[r0:r0 + kin, 0:nout],
                        preferred_element_type=jnp.float32) + b  # (B, nout) f32

            # Single-pass BN statistics (two independent reductions).
            s1 = jnp.sum(z, axis=0, keepdims=True)
            s2 = jnp.sum(z * z, axis=0, keepdims=True)
            mean = s1 * inv_b
            var = jnp.maximum(s2 * inv_b - mean * mean, 0.0)     # biased var

            # Fold BN into scale/shift; fuse ReLU + bf16 down-cast.
            a = g * jax.lax.rsqrt(var + EPS)                     # (1, nout)
            c = be - mean * a                                    # (1, nout)
            h = jnp.maximum(z * a + c, 0.0).astype(jnp.bfloat16)

        # Output layer, lane-dense (padded to 128 cols; extras are zero).
        r0, kin, nout = row_offsets[6], row_sizes[6], n_outs[6]
        logits = jnp.dot(h, w_ref[r0:r0 + kin, 0:nout],
                         preferred_element_type=jnp.float32) + v_ref[18:19, 0:nout]
        out_ref[...] = jax.nn.sigmoid(logits).astype(out_ref.dtype)

    return kernel


# --------------------------------------------------------------------------
# Wrapper
# --------------------------------------------------------------------------
def mi_meta_classifier_deep(x, w_slab, v_slab, meta):
    batch = x.shape[0]
    k0_rows = meta["k0_rows"]
    output_size = meta["output_size"]

    # No host-side pad/round-trip in the common case (input_size % 16 == 0);
    # only pad when the feature width is not a 16-multiple.
    if x.shape[1] != k0_rows:
        x = jnp.pad(x, ((0, 0), (0, k0_rows - x.shape[1])))

    dims = _layer_dims(meta["input_size"], output_size)
    flops = 2 * batch * sum(k * n for k, n in dims)
    bytes_accessed = (x.size * x.dtype.itemsize + w_slab.size * 2
                      + v_slab.size * 4 + batch * LANE * 4)
    transcendentals = batch * LANE + 6 * SLAB_COLS  # sigmoid exps + BN rsqrts

    # Batch-derived scoped-VMEM budget (capped below v7x's 64 MiB physical).
    param_bytes = w_slab.size * 2 + v_slab.size * 4
    live_act_bytes = batch * 256 * 4 * 4          # ~4 live f32 (B,256) temps
    io_bytes = batch * (k0_rows + LANE) * 4
    vmem_limit = int(min(56 * 1024 * 1024,
                         max(8 * 1024 * 1024,
                             2 * (param_bytes + live_act_bytes + io_bytes))))

    kernel = _make_kernel(batch, meta["row_offsets"], meta["row_sizes"],
                          meta["n_outs"])

    out_pad = pl.pallas_call(
        kernel,
        out_shape=jax.ShapeDtypeStruct((batch, LANE), jnp.float32),
        in_specs=[pl.BlockSpec(memory_space=pltpu.VMEM)] * 3,
        out_specs=pl.BlockSpec(memory_space=pltpu.VMEM),
        compiler_params=pltpu.CompilerParams(vmem_limit_bytes=vmem_limit),
        cost_estimate=pl.CostEstimate(flops=flops,
                                      transcendentals=transcendentals,
                                      bytes_accessed=bytes_accessed),
    )(x, w_slab, v_slab)
    return out_pad[:, :output_size]


# --------------------------------------------------------------------------
# Pure-JAX reference mirroring the kernel's numerics (bf16 weights AND bf16
# activations at every dot boundary, f32 accumulation & BN statistics).
# --------------------------------------------------------------------------
def reference_forward(x, params):
    h = x.astype(jnp.bfloat16)
    idx = 0
    for _ in range(6):
        w = params[idx].astype(jnp.bfloat16)
        b, g, be = params[idx + 1], params[idx + 2], params[idx + 3]
        idx += 4
        z = jnp.dot(h, w, preferred_element_type=jnp.float32) + b
        mean = jnp.mean(z, axis=0, keepdims=True)
        var = jnp.maximum(jnp.mean(z * z, axis=0, keepdims=True) - mean * mean, 0.0)
        a = g * jax.lax.rsqrt(var + EPS)
        c = be - mean * a
        h = jnp.maximum(z * a + c, 0.0).astype(jnp.bfloat16)
    w = params[idx].astype(jnp.bfloat16)
    b = params[idx + 1]
    return jax.nn.sigmoid(jnp.dot(h, w, preferred_element_type=jnp.float32) + b)


if __name__ == "__main__":
    batch = 8
    input_size = 32
    output_size = 2

    key = jax.random.PRNGKey(0)
    key, kx = jax.random.split(key)
    x = jax.random.normal(kx, (batch, input_size), jnp.float32)
    params = init_params(key, input_size, output_size)
    w_slab, v_slab, meta = pack_params(params, input_size, output_size)

    out = mi_meta_classifier_deep(x, w_slab, v_slab, meta)
    out = jax.block_until_ready(out)

    ref = reference_forward(x, params)
    assert out.shape == (batch, output_size), out.shape
    # bf16 activations round identically in kernel and reference; residual
    # mismatch is accumulation-order noise (<< 1 bf16 ulp per layer).
    assert jnp.allclose(out, ref, atol=3e-3, rtol=3e-3), (
        "mismatch vs reference:\n%r\n%r" % (out, ref))
    print("KERNEL_OK")
</pallas_src>

<mosaic_0001>
module attributes {stable_mosaic.version = 11 : i64} {
  func.func @kernel(%arg0: memref<8x32xf32, #tpu.memory_space<vmem>>, %arg1: memref<1440x256xbf16, #tpu.memory_space<vmem>>, %arg2: memref<24x256xf32, #tpu.memory_space<vmem>>, %arg3: memref<8x128xf32, #tpu.memory_space<vmem>>) attributes {dimension_semantics = [], scalar_prefetch = 0 : i64, scratch_operands = 0 : i64, tpu.core_type = #tpu.core_type<tc>} {
    %c0 = arith.constant 0 : index
    %c0_0 = arith.constant 0 : index
    %0 = vector.load %arg0[%c0, %c0_0] : memref<8x32xf32, #tpu.memory_space<vmem>>, vector<8x32xf32>
    %1 = arith.truncf %0 : vector<8x32xf32> to vector<8x32xbf16>
    %c0_1 = arith.constant 0 : index
    %c0_2 = arith.constant 0 : index
    %2 = vector.load %arg2[%c0_1, %c0_2] : memref<24x256xf32, #tpu.memory_space<vmem>>, vector<1x256xf32>
    %c1 = arith.constant 1 : index
    %c0_3 = arith.constant 0 : index
    %3 = vector.load %arg2[%c1, %c0_3] : memref<24x256xf32, #tpu.memory_space<vmem>>, vector<1x256xf32>
    %c2 = arith.constant 2 : index
    %c0_4 = arith.constant 0 : index
    %4 = vector.load %arg2[%c2, %c0_4] : memref<24x256xf32, #tpu.memory_space<vmem>>, vector<1x256xf32>
    %c0_5 = arith.constant 0 : index
    %c0_6 = arith.constant 0 : index
    %5 = vector.load %arg1[%c0_5, %c0_6] : memref<1440x256xbf16, #tpu.memory_space<vmem>>, vector<32x256xbf16>
    %cst = arith.constant dense<0.000000e+00> : vector<8x256xf32>
    %6 = tpu.matmul %1, %5, %cst {dimension_numbers = #tpu.dot_dimension_numbers<[1], [0], [0], [1], [0, 0, 1, 1], [], []>} : vector<8x32xbf16>, vector<32x256xbf16>, vector<8x256xf32> -> vector<8x256xf32>
    %7 = vector.broadcast %2 : vector<1x256xf32> to vector<8x256xf32>
    %8 = arith.addf %6, %7 : vector<8x256xf32>
    %cst_7 = arith.constant dense<0.000000e+00> : vector<256xf32>
    %9 = vector.multi_reduction <add>, %8, %cst_7 [0] : vector<8x256xf32> to vector<256xf32>
    %10 = vector.shape_cast %9 : vector<256xf32> to vector<1x256xf32>
    %11 = arith.mulf %8, %8 : vector<8x256xf32>
    %cst_8 = arith.constant dense<0.000000e+00> : vector<256xf32>
    %12 = vector.multi_reduction <add>, %11, %cst_8 [0] : vector<8x256xf32> to vector<256xf32>
    %13 = vector.shape_cast %12 : vector<256xf32> to vector<1x256xf32>
    %cst_9 = arith.constant 1.250000e-01 : f32
    %14 = vector.broadcast %cst_9 : f32 to vector<1x256xf32>
    %15 = arith.mulf %10, %14 : vector<1x256xf32>
    %cst_10 = arith.constant 1.250000e-01 : f32
    %16 = vector.broadcast %cst_10 : f32 to vector<1x256xf32>
    %17 = arith.mulf %13, %16 : vector<1x256xf32>
    %18 = arith.mulf %15, %15 : vector<1x256xf32>
    %19 = arith.subf %17, %18 : vector<1x256xf32>
    %cst_11 = arith.constant 0.000000e+00 : f32
    %20 = vector.broadcast %cst_11 : f32 to vector<1x256xf32>
    %21 = arith.maximumf %19, %20 : vector<1x256xf32>
    %cst_12 = arith.constant 9.99999974E-6 : f32
    %22 = vector.broadcast %cst_12 : f32 to vector<1x256xf32>
    %23 = arith.addf %21, %22 : vector<1x256xf32>
    %24 = math.rsqrt %23 : vector<1x256xf32>
    %25 = arith.mulf %3, %24 : vector<1x256xf32>
    %26 = arith.mulf %15, %25 : vector<1x256xf32>
    %27 = arith.subf %4, %26 : vector<1x256xf32>
    %28 = vector.broadcast %25 : vector<1x256xf32> to vector<8x256xf32>
    %29 = arith.mulf %8, %28 : vector<8x256xf32>
    %30 = vector.broadcast %27 : vector<1x256xf32> to vector<8x256xf32>
    %31 = arith.addf %29, %30 : vector<8x256xf32>
    %cst_13 = arith.constant 0.000000e+00 : f32
    %32 = vector.broadcast %cst_13 : f32 to vector<8x256xf32>
    %33 = arith.maximumf %31, %32 : vector<8x256xf32>
    %34 = arith.truncf %33 : vector<8x256xf32> to vector<8x256xbf16>
    %c3 = arith.constant 3 : index
    %c0_14 = arith.constant 0 : index
    %35 = vector.load %arg2[%c3, %c0_14] : memref<24x256xf32, #tpu.memory_space<vmem>>, vector<1x256xf32>
    %c4 = arith.constant 4 : index
    %c0_15 = arith.constant 0 : index
    %36 = vector.load %arg2[%c4, %c0_15] : memref<24x256xf32, #tpu.memory_space<vmem>>, vector<1x256xf32>
    %c5 = arith.constant 5 : index
    %c0_16 = arith.constant 0 : index
    %37 = vector.load %arg2[%c5, %c0_16] : memref<24x256xf32, #tpu.memory_space<vmem>>, vector<1x256xf32>
    %c32 = arith.constant 32 : index
    %c0_17 = arith.constant 0 : index
    %38 = vector.load %arg1[%c32, %c0_17] : memref<1440x256xbf16, #tpu.memory_space<vmem>>, vector<256x256xbf16>
    %cst_18 = arith.constant dense<0.000000e+00> : vector<8x256xf32>
    %39 = tpu.matmul %34, %38, %cst_18 {dimension_numbers = #tpu.dot_dimension_numbers<[1], [0], [0], [1], [0, 0, 1, 1], [], []>} : vector<8x256xbf16>, vector<256x256xbf16>, vector<8x256xf32> -> vector<8x256xf32>
    %40 = vector.broadcast %35 : vector<1x256xf32> to vector<8x256xf32>
    %41 = arith.addf %39, %40 : vector<8x256xf32>
    %cst_19 = arith.constant dense<0.000000e+00> : vector<256xf32>
    %42 = vector.multi_reduction <add>, %41, %cst_19 [0] : vector<8x256xf32> to vector<256xf32>
    %43 = vector.shape_cast %42 : vector<256xf32> to vector<1x256xf32>
    %44 = arith.mulf %41, %41 : vector<8x256xf32>
    %cst_20 = arith.constant dense<0.000000e+00> : vector<256xf32>
    %45 = vector.multi_reduction <add>, %44, %cst_20 [0] : vector<8x256xf32> to vector<256xf32>
    %46 = vector.shape_cast %45 : vector<256xf32> to vector<1x256xf32>
    %cst_21 = arith.constant 1.250000e-01 : f32
    %47 = vector.broadcast %cst_21 : f32 to vector<1x256xf32>
    %48 = arith.mulf %43, %47 : vector<1x256xf32>
    %cst_22 = arith.constant 1.250000e-01 : f32
    %49 = vector.broadcast %cst_22 : f32 to vector<1x256xf32>
    %50 = arith.mulf %46, %49 : vector<1x256xf32>
    %51 = arith.mulf %48, %48 : vector<1x256xf32>
    %52 = arith.subf %50, %51 : vector<1x256xf32>
    %cst_23 = arith.constant 0.000000e+00 : f32
    %53 = vector.broadcast %cst_23 : f32 to vector<1x256xf32>
    %54 = arith.maximumf %52, %53 : vector<1x256xf32>
    %cst_24 = arith.constant 9.99999974E-6 : f32
    %55 = vector.broadcast %cst_24 : f32 to vector<1x256xf32>
    %56 = arith.addf %54, %55 : vector<1x256xf32>
    %57 = math.rsqrt %56 : vector<1x256xf32>
    %58 = arith.mulf %36, %57 : vector<1x256xf32>
    %59 = arith.mulf %48, %58 : vector<1x256xf32>
    %60 = arith.subf %37, %59 : vector<1x256xf32>
    %61 = vector.broadcast %58 : vector<1x256xf32> to vector<8x256xf32>
    %62 = arith.mulf %41, %61 : vector<8x256xf32>
    %63 = vector.broadcast %60 : vector<1x256xf32> to vector<8x256xf32>
    %64 = arith.addf %62, %63 : vector<8x256xf32>
    %cst_25 = arith.constant 0.000000e+00 : f32
    %65 = vector.broadcast %cst_25 : f32 to vector<8x256xf32>
    %66 = arith.maximumf %64, %65 : vector<8x256xf32>
    %67 = arith.truncf %66 : vector<8x256xf32> to vector<8x256xbf16>
    %c6 = arith.constant 6 : index
    %c0_26 = arith.constant 0 : index
    %68 = vector.load %arg2[%c6, %c0_26] : memref<24x256xf32, #tpu.memory_space<vmem>>, vector<1x256xf32>
    %c7 = arith.constant 7 : index
    %c0_27 = arith.constant 0 : index
    %69 = vector.load %arg2[%c7, %c0_27] : memref<24x256xf32, #tpu.memory_space<vmem>>, vector<1x256xf32>
    %c8 = arith.constant 8 : index
    %c0_28 = arith.constant 0 : index
    %70 = vector.load %arg2[%c8, %c0_28] : memref<24x256xf32, #tpu.memory_space<vmem>>, vector<1x256xf32>
    %c288 = arith.constant 288 : index
    %c0_29 = arith.constant 0 : index
    %71 = vector.load %arg1[%c288, %c0_29] : memref<1440x256xbf16, #tpu.memory_space<vmem>>, vector<256x256xbf16>
    %cst_30 = arith.constant dense<0.000000e+00> : vector<8x256xf32>
    %72 = tpu.matmul %67, %71, %cst_30 {dimension_numbers = #tpu.dot_dimension_numbers<[1], [0], [0], [1], [0, 0, 1, 1], [], []>} : vector<8x256xbf16>, vector<256x256xbf16>, vector<8x256xf32> -> vector<8x256xf32>
    %73 = vector.broadcast %68 : vector<1x256xf32> to vector<8x256xf32>
    %74 = arith.addf %72, %73 : vector<8x256xf32>
    %cst_31 = arith.constant dense<0.000000e+00> : vector<256xf32>
    %75 = vector.multi_reduction <add>, %74, %cst_31 [0] : vector<8x256xf32> to vector<256xf32>
    %76 = vector.shape_cast %75 : vector<256xf32> to vector<1x256xf32>
    %77 = arith.mulf %74, %74 : vector<8x256xf32>
    %cst_32 = arith.constant dense<0.000000e+00> : vector<256xf32>
    %78 = vector.multi_reduction <add>, %77, %cst_32 [0] : vector<8x256xf32> to vector<256xf32>
    %79 = vector.shape_cast %78 : vector<256xf32> to vector<1x256xf32>
    %cst_33 = arith.constant 1.250000e-01 : f32
    %80 = vector.broadcast %cst_33 : f32 to vector<1x256xf32>
    %81 = arith.mulf %76, %80 : vector<1x256xf32>
    %cst_34 = arith.constant 1.250000e-01 : f32
    %82 = vector.broadcast %cst_34 : f32 to vector<1x256xf32>
    %83 = arith.mulf %79, %82 : vector<1x256xf32>
    %84 = arith.mulf %81, %81 : vector<1x256xf32>
    %85 = arith.subf %83, %84 : vector<1x256xf32>
    %cst_35 = arith.constant 0.000000e+00 : f32
    %86 = vector.broadcast %cst_35 : f32 to vector<1x256xf32>
    %87 = arith.maximumf %85, %86 : vector<1x256xf32>
    %cst_36 = arith.constant 9.99999974E-6 : f32
    %88 = vector.broadcast %cst_36 : f32 to vector<1x256xf32>
    %89 = arith.addf %87, %88 : vector<1x256xf32>
    %90 = math.rsqrt %89 : vector<1x256xf32>
    %91 = arith.mulf %69, %90 : vector<1x256xf32>
    %92 = arith.mulf %81, %91 : vector<1x256xf32>
    %93 = arith.subf %70, %92 : vector<1x256xf32>
    %94 = vector.broadcast %91 : vector<1x256xf32> to vector<8x256xf32>
    %95 = arith.mulf %74, %94 : vector<8x256xf32>
    %96 = vector.broadcast %93 : vector<1x256xf32> to vector<8x256xf32>
    %97 = arith.addf %95, %96 : vector<8x256xf32>
    %cst_37 = arith.constant 0.000000e+00 : f32
    %98 = vector.broadcast %cst_37 : f32 to vector<8x256xf32>
    %99 = arith.maximumf %97, %98 : vector<8x256xf32>
    %100 = arith.truncf %99 : vector<8x256xf32> to vector<8x256xbf16>
    %c9 = arith.constant 9 : index
    %c0_38 = arith.constant 0 : index
    %101 = vector.load %arg2[%c9, %c0_38] : memref<24x256xf32, #tpu.memory_space<vmem>>, vector<1x256xf32>
    %c10 = arith.constant 10 : index
    %c0_39 = arith.constant 0 : index
    %102 = vector.load %arg2[%c10, %c0_39] : memref<24x256xf32, #tpu.memory_space<vmem>>, vector<1x256xf32>
    %c11 = arith.constant 11 : index
    %c0_40 = arith.constant 0 : index
    %103 = vector.load %arg2[%c11, %c0_40] : memref<24x256xf32, #tpu.memory_space<vmem>>, vector<1x256xf32>
    %c544 = arith.constant 544 : index
    %c0_41 = arith.constant 0 : index
    %104 = vector.load %arg1[%c544, %c0_41] : memref<1440x256xbf16, #tpu.memory_space<vmem>>, vector<256x256xbf16>
    %cst_42 = arith.constant dense<0.000000e+00> : vector<8x256xf32>
    %105 = tpu.matmul %100, %104, %cst_42 {dimension_numbers = #tpu.dot_dimension_numbers<[1], [0], [0], [1], [0, 0, 1, 1], [], []>} : vector<8x256xbf16>, vector<256x256xbf16>, vector<8x256xf32> -> vector<8x256xf32>
    %106 = vector.broadcast %101 : vector<1x256xf32> to vector<8x256xf32>
    %107 = arith.addf %105, %106 : vector<8x256xf32>
    %cst_43 = arith.constant dense<0.000000e+00> : vector<256xf32>
    %108 = vector.multi_reduction <add>, %107, %cst_43 [0] : vector<8x256xf32> to vector<256xf32>
    %109 = vector.shape_cast %108 : vector<256xf32> to vector<1x256xf32>
    %110 = arith.mulf %107, %107 : vector<8x256xf32>
    %cst_44 = arith.constant dense<0.000000e+00> : vector<256xf32>
    %111 = vector.multi_reduction <add>, %110, %cst_44 [0] : vector<8x256xf32> to vector<256xf32>
    %112 = vector.shape_cast %111 : vector<256xf32> to vector<1x256xf32>
    %cst_45 = arith.constant 1.250000e-01 : f32
    %113 = vector.broadcast %cst_45 : f32 to vector<1x256xf32>
    %114 = arith.mulf %109, %113 : vector<1x256xf32>
    %cst_46 = arith.constant 1.250000e-01 : f32
    %115 = vector.broadcast %cst_46 : f32 to vector<1x256xf32>
    %116 = arith.mulf %112, %115 : vector<1x256xf32>
    %117 = arith.mulf %114, %114 : vector<1x256xf32>
    %118 = arith.subf %116, %117 : vector<1x256xf32>
    %cst_47 = arith.constant 0.000000e+00 : f32
    %119 = vector.broadcast %cst_47 : f32 to vector<1x256xf32>
    %120 = arith.maximumf %118, %119 : vector<1x256xf32>
    %cst_48 = arith.constant 9.99999974E-6 : f32
    %121 = vector.broadcast %cst_48 : f32 to vector<1x256xf32>
    %122 = arith.addf %120, %121 : vector<1x256xf32>
    %123 = math.rsqrt %122 : vector<1x256xf32>
    %124 = arith.mulf %102, %123 : vector<1x256xf32>
    %125 = arith.mulf %114, %124 : vector<1x256xf32>
    %126 = arith.subf %103, %125 : vector<1x256xf32>
    %127 = vector.broadcast %124 : vector<1x256xf32> to vector<8x256xf32>
    %128 = arith.mulf %107, %127 : vector<8x256xf32>
    %129 = vector.broadcast %126 : vector<1x256xf32> to vector<8x256xf32>
    %130 = arith.addf %128, %129 : vector<8x256xf32>
    %cst_49 = arith.constant 0.000000e+00 : f32
    %131 = vector.broadcast %cst_49 : f32 to vector<8x256xf32>
    %132 = arith.maximumf %130, %131 : vector<8x256xf32>
    %133 = arith.truncf %132 : vector<8x256xf32> to vector<8x256xbf16>
    %c12 = arith.constant 12 : index
    %c0_50 = arith.constant 0 : index
    %134 = vector.load %arg2[%c12, %c0_50] : memref<24x256xf32, #tpu.memory_space<vmem>>, vector<1x256xf32>
    %c13 = arith.constant 13 : index
    %c0_51 = arith.constant 0 : index
    %135 = vector.load %arg2[%c13, %c0_51] : memref<24x256xf32, #tpu.memory_space<vmem>>, vector<1x256xf32>
    %c14 = arith.constant 14 : index
    %c0_52 = arith.constant 0 : index
    %136 = vector.load %arg2[%c14, %c0_52] : memref<24x256xf32, #tpu.memory_space<vmem>>, vector<1x256xf32>
    %c800 = arith.constant 800 : index
    %c0_53 = arith.constant 0 : index
    %137 = vector.load %arg1[%c800, %c0_53] : memref<1440x256xbf16, #tpu.memory_space<vmem>>, vector<256x256xbf16>
    %cst_54 = arith.constant dense<0.000000e+00> : vector<8x256xf32>
    %138 = tpu.matmul %133, %137, %cst_54 {dimension_numbers = #tpu.dot_dimension_numbers<[1], [0], [0], [1], [0, 0, 1, 1], [], []>} : vector<8x256xbf16>, vector<256x256xbf16>, vector<8x256xf32> -> vector<8x256xf32>
    %139 = vector.broadcast %134 : vector<1x256xf32> to vector<8x256xf32>
    %140 = arith.addf %138, %139 : vector<8x256xf32>
    %cst_55 = arith.constant dense<0.000000e+00> : vector<256xf32>
    %141 = vector.multi_reduction <add>, %140, %cst_55 [0] : vector<8x256xf32> to vector<256xf32>
    %142 = vector.shape_cast %141 : vector<256xf32> to vector<1x256xf32>
    %143 = arith.mulf %140, %140 : vector<8x256xf32>
    %cst_56 = arith.constant dense<0.000000e+00> : vector<256xf32>
    %144 = vector.multi_reduction <add>, %143, %cst_56 [0] : vector<8x256xf32> to vector<256xf32>
    %145 = vector.shape_cast %144 : vector<256xf32> to vector<1x256xf32>
    %cst_57 = arith.constant 1.250000e-01 : f32
    %146 = vector.broadcast %cst_57 : f32 to vector<1x256xf32>
    %147 = arith.mulf %142, %146 : vector<1x256xf32>
    %cst_58 = arith.constant 1.250000e-01 : f32
    %148 = vector.broadcast %cst_58 : f32 to vector<1x256xf32>
    %149 = arith.mulf %145, %148 : vector<1x256xf32>
    %150 = arith.mulf %147, %147 : vector<1x256xf32>
    %151 = arith.subf %149, %150 : vector<1x256xf32>
    %cst_59 = arith.constant 0.000000e+00 : f32
    %152 = vector.broadcast %cst_59 : f32 to vector<1x256xf32>
    %153 = arith.maximumf %151, %152 : vector<1x256xf32>
    %cst_60 = arith.constant 9.99999974E-6 : f32
    %154 = vector.broadcast %cst_60 : f32 to vector<1x256xf32>
    %155 = arith.addf %153, %154 : vector<1x256xf32>
    %156 = math.rsqrt %155 : vector<1x256xf32>
    %157 = arith.mulf %135, %156 : vector<1x256xf32>
    %158 = arith.mulf %147, %157 : vector<1x256xf32>
    %159 = arith.subf %136, %158 : vector<1x256xf32>
    %160 = vector.broadcast %157 : vector<1x256xf32> to vector<8x256xf32>
    %161 = arith.mulf %140, %160 : vector<8x256xf32>
    %162 = vector.broadcast %159 : vector<1x256xf32> to vector<8x256xf32>
    %163 = arith.addf %161, %162 : vector<8x256xf32>
    %cst_61 = arith.constant 0.000000e+00 : f32
    %164 = vector.broadcast %cst_61 : f32 to vector<8x256xf32>
    %165 = arith.maximumf %163, %164 : vector<8x256xf32>
    %166 = arith.truncf %165 : vector<8x256xf32> to vector<8x256xbf16>
    %c15 = arith.constant 15 : index
    %c0_62 = arith.constant 0 : index
    %167 = vector.load %arg2[%c15, %c0_62] : memref<24x256xf32, #tpu.memory_space<vmem>>, vector<1x128xf32>
    %c16 = arith.constant 16 : index
    %c0_63 = arith.constant 0 : index
    %168 = vector.load %arg2[%c16, %c0_63] : memref<24x256xf32, #tpu.memory_space<vmem>>, vector<1x128xf32>
    %c17 = arith.constant 17 : index
    %c0_64 = arith.constant 0 : index
    %169 = vector.load %arg2[%c17, %c0_64] : memref<24x256xf32, #tpu.memory_space<vmem>>, vector<1x128xf32>
    %c1056 = arith.constant 1056 : index
    %c0_65 = arith.constant 0 : index
    %170 = vector.load %arg1[%c1056, %c0_65] : memref<1440x256xbf16, #tpu.memory_space<vmem>>, vector<256x128xbf16>
    %cst_66 = arith.constant dense<0.000000e+00> : vector<8x128xf32>
    %171 = tpu.matmul %166, %170, %cst_66 {dimension_numbers = #tpu.dot_dimension_numbers<[1], [0], [0], [1], [0, 0, 1, 1], [], []>} : vector<8x256xbf16>, vector<256x128xbf16>, vector<8x128xf32> -> vector<8x128xf32>
    %172 = vector.broadcast %167 : vector<1x128xf32> to vector<8x128xf32>
    %173 = arith.addf %171, %172 : vector<8x128xf32>
    %cst_67 = arith.constant dense<0.000000e+00> : vector<128xf32>
    %174 = vector.multi_reduction <add>, %173, %cst_67 [0] : vector<8x128xf32> to vector<128xf32>
    %175 = vector.shape_cast %174 : vector<128xf32> to vector<1x128xf32>
    %176 = arith.mulf %173, %173 : vector<8x128xf32>
    %cst_68 = arith.constant dense<0.000000e+00> : vector<128xf32>
    %177 = vector.multi_reduction <add>, %176, %cst_68 [0] : vector<8x128xf32> to vector<128xf32>
    %178 = vector.shape_cast %177 : vector<128xf32> to vector<1x128xf32>
    %cst_69 = arith.constant 1.250000e-01 : f32
    %179 = vector.broadcast %cst_69 : f32 to vector<1x128xf32>
    %180 = arith.mulf %175, %179 : vector<1x128xf32>
    %cst_70 = arith.constant 1.250000e-01 : f32
    %181 = vector.broadcast %cst_70 : f32 to vector<1x128xf32>
    %182 = arith.mulf %178, %181 : vector<1x128xf32>
    %183 = arith.mulf %180, %180 : vector<1x128xf32>
    %184 = arith.subf %182, %183 : vector<1x128xf32>
    %cst_71 = arith.constant 0.000000e+00 : f32
    %185 = vector.broadcast %cst_71 : f32 to vector<1x128xf32>
    %186 = arith.maximumf %184, %185 : vector<1x128xf32>
    %cst_72 = arith.constant 9.99999974E-6 : f32
    %187 = vector.broadcast %cst_72 : f32 to vector<1x128xf32>
    %188 = arith.addf %186, %187 : vector<1x128xf32>
    %189 = math.rsqrt %188 : vector<1x128xf32>
    %190 = arith.mulf %168, %189 : vector<1x128xf32>
    %191 = arith.mulf %180, %190 : vector<1x128xf32>
    %192 = arith.subf %169, %191 : vector<1x128xf32>
    %193 = vector.broadcast %190 : vector<1x128xf32> to vector<8x128xf32>
    %194 = arith.mulf %173, %193 : vector<8x128xf32>
    %195 = vector.broadcast %192 : vector<1x128xf32> to vector<8x128xf32>
    %196 = arith.addf %194, %195 : vector<8x128xf32>
    %cst_73 = arith.constant 0.000000e+00 : f32
    %197 = vector.broadcast %cst_73 : f32 to vector<8x128xf32>
    %198 = arith.maximumf %196, %197 : vector<8x128xf32>
    %199 = arith.truncf %198 : vector<8x128xf32> to vector<8x128xbf16>
    %c1312 = arith.constant 1312 : index
    %c0_74 = arith.constant 0 : index
    %200 = vector.load %arg1[%c1312, %c0_74] : memref<1440x256xbf16, #tpu.memory_space<vmem>>, vector<128x128xbf16>
    %cst_75 = arith.constant dense<0.000000e+00> : vector<8x128xf32>
    %201 = tpu.matmul %199, %200, %cst_75 {dimension_numbers = #tpu.dot_dimension_numbers<[1], [0], [0], [1], [0, 0, 1, 1], [], []>} : vector<8x128xbf16>, vector<128x128xbf16>, vector<8x128xf32> -> vector<8x128xf32>
    %c18 = arith.constant 18 : index
    %c0_76 = arith.constant 0 : index
    %202 = vector.load %arg2[%c18, %c0_76] : memref<24x256xf32, #tpu.memory_space<vmem>>, vector<1x128xf32>
    %203 = vector.broadcast %202 : vector<1x128xf32> to vector<8x128xf32>
    %204 = arith.addf %201, %203 : vector<8x128xf32>
    %205 = arith.negf %204 : vector<8x128xf32>
    %206 = math.exp %205 : vector<8x128xf32>
    %cst_77 = arith.constant 1.000000e+00 : f32
    %207 = vector.broadcast %cst_77 : f32 to vector<8x128xf32>
    %208 = arith.addf %207, %206 : vector<8x128xf32>
    %209 = arith.divf %207, %208 : vector<8x128xf32>
    %c0_78 = arith.constant 0 : index
    %c0_79 = arith.constant 0 : index
    %210 = vector.load %arg3[%c0_78, %c0_79] : memref<8x128xf32, #tpu.memory_space<vmem>>, vector<8x128xf32>
    tpu.vector_store %arg3[%c0_78, %c0_79], %209 {strides = array<i32>} : memref<8x128xf32, #tpu.memory_space<vmem>>, vector<8x128xf32>,
    return
  }
}

</mosaic_0001>

<bundles_post_ra>
// kernel: tpu_custom_call.1
= control target key start
LH: loop header
LB: loop body
LE: loop exit
PB: predicated region body
PF: predicated region fallthrough
CT: control target
= control target key end

     0   :  { %8 = vsyncpa [#allocation3], 0  ;;  %s2717_s0 = inlined_call_operand.hbm [shape: f32[8,32], index: 0, kind: input, shape index: {}]   ;;  %s2718_s1 = inlined_call_operand.hbm [shape: bf16[1440,256], index: 1, kind: input, shape index: {}]   ;;  %s2719_s2 = inlined_call_operand.hbm [shape: f32[24,256], index: 2, kind: input, shape index: {}]   ;;  %s2720_s3 = inlined_call_operand.hbm [shape: f32[8,128], index: 3, kind: output, shape index: {}]  }
   0x1   :  { %9 = vsyncpa [#allocation6], 0 }
   0x2   :  { %10 = vsyncpa [#allocation4], 0  ;;  %s2581_s12 = smov [#allocation5]   ;;  %s2487_s16 = scalar_lea.hbm %s2718_s1, 23040 }
   0x3   :  { %s26_s13 = sshll.u32 %s2581_s12, 4  ;;  %p2488_p0 = scmp.ne.s32.totalorder %s2718_s1, %s2487_s16  ;;  %s27_s13 = int_to_ptr.vmem [resolvable:$true] %s26_s13 }
   0x4   :  { %p2491_p1 = scmp.lt.u32.totalorder %s2487_s16, %s2718_s1 }
   0x6   :  { %p2493_p2 = pnand %p2491_p1, %p2488_p0 }
   0x8   :  { %2496 = shalt.err (!%p2493_p2)
}
   0x9   :  { %s2497_s21 = scalar_lea.vmem %s27_s13, 23040  ;;  %p2502_p4 = scmp.lt.s32.totalorder %s27_s13, %s27_s13 }
   0xa   :  { %p2498_p3 = scmp.ne.s32.totalorder %s27_s13, %s2497_s21  ;;  %p2503_p5 = scmp.lt.s32.totalorder %s2497_s21, %s2497_s21 }
   0xc   :  { %p2504_p6 = por %p2503_p5, %p2502_p4 }
   0xe   :  { %p2505_p7 = pnand %p2504_p6, %p2498_p3 }
  0x10   :  { %2508 = shalt.err (!%p2505_p7)
}
  0x11   :  { %s2582_s22 = smov 128   ;;  %s2583_s23 = smov 8  }
  0x12   :  { %32 = dma.hbm_to_vmem [thread:$0]  %s2718_s1, 23040, %s27_s13, [#allocation6], %s2582_s22, %s2582_s22, %s2583_s23  }
  0x13   :  { %s2584_s26 = smov [#allocation2]   ;;  %s2585_s28 = smov [#allocation7]  }
  0x14   :  { %s17_s27 = sshll.u32 %s2584_s26, 4  ;;  %s38_s29 = sshll.u32 %s2585_s28, 4  ;;  %s18_s27 = int_to_ptr.vmem [resolvable:$true] %s17_s27  ;;  %s39_s29 = int_to_ptr.vmem [resolvable:$true] %s38_s29 }
  0x15   :  { %s2509_s5 = scalar_lea.hbm %s2717_s0, 128 }
  0x16   :  { %p2510_p8 = scmp.ne.s32.totalorder %s2717_s0, %s2509_s5  ;;  %p2513_p9 = scmp.lt.u32.totalorder %s2509_s5, %s2717_s0 }
  0x18   :  { %p2515_p10 = pnand %p2513_p9, %p2510_p8 }
  0x1a   :  { %2518 = shalt.err (!%p2515_p10)
}
  0x1b   :  { %s2519_s1 = scalar_lea.vmem %s18_s27, 128  ;;  %p2524_p12 = scmp.lt.s32.totalorder %s18_s27, %s18_s27 }
  0x1c   :  { %p2520_p11 = scmp.ne.s32.totalorder %s18_s27, %s2519_s1  ;;  %p2525_p13 = scmp.lt.s32.totalorder %s2519_s1, %s2519_s1 }
  0x1e   :  { %p2526_p0 = por %p2525_p13, %p2524_p12 }
  0x20   :  { %p2527_p1 = pnand %p2526_p0, %p2520_p11 }
  0x22   :  { %2530 = shalt.err (!%p2527_p1)
}
  0x23   :  { %20 = dma.hbm_to_vmem [thread:$0]  %s2717_s0, 128, %s18_s27, [#allocation3]  }
  0x24   :  { %s2531_s14 = scalar_lea.hbm %s2719_s2, 768 }
  0x25   :  { %p2532_p2 = scmp.ne.s32.totalorder %s2719_s2, %s2531_s14  ;;  %p2535_p3 = scmp.lt.u32.totalorder %s2531_s14, %s2719_s2 }
  0x27   :  { %p2537_p4 = pnand %p2535_p3, %p2532_p2 }
  0x29   :  { %2540 = shalt.err (!%p2537_p4)
}
  0x2a   :  { %s2541_s19 = scalar_lea.vmem %s39_s29, 768  ;;  %p2546_p6 = scmp.lt.s32.totalorder %s39_s29, %s39_s29 }
  0x2b   :  { %p2542_p5 = scmp.ne.s32.totalorder %s39_s29, %s2541_s19  ;;  %p2547_p7 = scmp.lt.s32.totalorder %s2541_s19, %s2541_s19 }
  0x2d   :  { %p2548_p8 = por %p2547_p7, %p2546_p6 }
  0x2f   :  { %p2549_p9 = pnand %p2548_p8, %p2542_p5 }
  0x31   :  { %2552 = shalt.err (!%p2549_p9)
}
  0x32   :  { %s2586_s0 = smov 256   ;;  %s2587_s20 = smov 16  }
  0x33   :  { %44 = dma.hbm_to_vmem [thread:$0]  %s2719_s2, 768, %s39_s29, [#allocation6], %s2586_s0, %s2586_s0, %s2587_s20  }
  0x34   :  { %2575 = dma.done.wait [#allocation3], 128  }
  0x35   :  { %2576 = vsyncadd [#allocation3], 4294967168 }
  0x36   :  { %2577 = dma.done.wait [#allocation6], 23808  }
  0x37   :  { %2578 = vsyncadd [#allocation6], 4294943488  ;;  %v2588_v0 = vmov 0   ;;  %v2239_v1 = vld [vmem:[#allocation5 + $0x4] ss:$8 sps:$4 sm:$0xff]   ;;  %v55_v5 = vld [vmem:[#allocation2] sm:$0xff]  ;;  %v67_v39 = vlaneseq }
  0x38   :  { %133 = vmatprep.mubr.bf16.mxu0 %v2588_v0  ;;  %v2241_v2 = vld [vmem:[#allocation5] ss:$8 sps:$4 sm:$0xff]   ;;  %101 = vmatprep.subr.bf16.mxu0 %v2239_v1  ;;  %v2242_v3 = vld [vmem:[#allocation5 + $0x14] ss:$8 sps:$4 sm:$0xff]   ;;  %v2244_v4 = vld [vmem:[#allocation5 + $0x10] ss:$8 sps:$4 sm:$0xff]   ;;  %v56_v6 = vpack.c.bf16 %v55_v5, %v55_v5 }
  0x39   :  { %102 = vmatpush1.bf16.msra.mxu0 %v2241_v2  ;;  %vm97_vm0 = vcmask 261120   ;;  %v2245_v7 = vld [vmem:[#allocation5 + $0x24] ss:$8 sps:$4 sm:$0xff]   ;;  %v2247_v8 = vld [vmem:[#allocation5 + $0x20] ss:$8 sps:$4 sm:$0xff]   ;;  %v68_v40 = vshrl.u32 %v67_v39, 7 }
  0x3a   :  { %103 = vmatprep.subr.bf16.mxu0 %v2242_v3  ;;  %461 = vmatprep.subr.bf16.mxu1 %v2245_v7  ;;  %v2248_v9 = vld [vmem:[#allocation5 + $0x34] ss:$8 sps:$4 sm:$0xff]   ;;  %v2250_v10 = vld [vmem:[#allocation5 + $0x30] ss:$8 sps:$4 sm:$0xff]   ;;  %v2251_v11 = vld [vmem:[#allocation5 + $0x44] ss:$8 sps:$4 sm:$0xff]  }
  0x3b   :  { %462 = vmatpush1.bf16.msra.mxu1 %v2247_v8  ;;  %v2253_v12 = vld [vmem:[#allocation5 + $0x40] ss:$8 sps:$4 sm:$0xff]   ;;  %v2254_v13 = vld [vmem:[#allocation5 + $0x54] ss:$8 sps:$4 sm:$0xff]   ;;  %v2256_v14 = vld [vmem:[#allocation5 + $0x50] ss:$8 sps:$4 sm:$0xff]  }
  0x3c   :  { %463 = vmatprep.subr.bf16.mxu1 %v2248_v9  ;;  %v2257_v15 = vld [vmem:[#allocation5 + $0x64] ss:$8 sps:$4 sm:$0xff]   ;;  %v2259_v16 = vld [vmem:[#allocation5 + $0x60] ss:$8 sps:$4 sm:$0xff]   ;;  %v2260_v17 = vld [vmem:[#allocation5 + $0x74] ss:$8 sps:$4 sm:$0xff]  }
  0x3d   :  { %104 = vmatpush1.bf16.msra.mxu0 %v2244_v4  ;;  %v2262_v18 = vld [vmem:[#allocation5 + $0x70] ss:$8 sps:$4 sm:$0xff]   ;;  %v2263_v19 = vld [vmem:[#allocation5 + $0x84] ss:$8 sps:$4 sm:$0xff]   ;;  %v2265_v20 = vld [vmem:[#allocation5 + $0x80] ss:$8 sps:$4 sm:$0xff]  }
  0x3e   :  { %v2266_v21 = vld [vmem:[#allocation5 + $0x94] ss:$8 sps:$4 sm:$0xff]   ;;  %v2268_v22 = vld [vmem:[#allocation5 + $0x90] ss:$8 sps:$4 sm:$0xff]   ;;  %v2269_v23 = vld [vmem:[#allocation5 + $0xa4] ss:$8 sps:$4 sm:$0xff]  }
  0x3f   :  { %464 = vmatpush1.bf16.msra.mxu1 %v2250_v10  ;;  %v2271_v24 = vld [vmem:[#allocation5 + $0xa0] ss:$8 sps:$4 sm:$0xff]   ;;  %v2272_v25 = vld [vmem:[#allocation5 + $0xb4] ss:$8 sps:$4 sm:$0xff]   ;;  %v2274_v26 = vld [vmem:[#allocation5 + $0xb0] ss:$8 sps:$4 sm:$0xff]  }
  0x40   :  { %2022 = vmatmul.mubr.msk.bf16.vlgmr.msra.gmra.mrb[0].mxu0 %vm97_vm0, %v56_v6  ;;  %465 = vmatprep.subr.bf16.mxu1 %v2251_v11  ;;  %v2275_v27 = vld [vmem:[#allocation5 + $0xc4] ss:$8 sps:$4 sm:$0xff]   ;;  %v2277_v28 = vld [vmem:[#allocation5 + $0xc0] ss:$8 sps:$4 sm:$0xff]   ;;  %v2278_v29 = vld [vmem:[#allocation5 + $0xd4] ss:$8 sps:$4 sm:$0xff]  }
  0x41   :  { %v2280_v30 = vld [vmem:[#allocation5 + $0xd0] ss:$8 sps:$4 sm:$0xff]   ;;  %v2281_v31 = vld [vmem:[#allocation5 + $0xe4] ss:$8 sps:$4 sm:$0xff]   ;;  %v2283_v32 = vld [vmem:[#allocation5 + $0xe0] ss:$8 sps:$4 sm:$0xff]  }
  0x42   :  { %v2284_v33 = vld [vmem:[#allocation5 + $0xf4] ss:$8 sps:$4 sm:$0xff]   ;;  %v2286_v34 = vld [vmem:[#allocation5 + $0xf0] ss:$8 sps:$4 sm:$0xff]   ;;  %v2287_v35 = vld [vmem:[#allocation5 + $0x104] ss:$8 sps:$4 sm:$0xff]  }
  0x43   :  { %466 = vmatpush1.bf16.msra.mxu1 %v2253_v12  ;;  %v2289_v36 = vld [vmem:[#allocation5 + $0x100] ss:$8 sps:$4 sm:$0xff]   ;;  %v2290_v37 = vld [vmem:[#allocation5 + $0x114] ss:$8 sps:$4 sm:$0xff]   ;;  %v2292_v38 = vld [vmem:[#allocation5 + $0x110] ss:$8 sps:$4 sm:$0xff]  }
  0x44   :  { %467 = vmatprep.subr.bf16.mxu1 %v2254_v13  ;;  %v2649_v41 = vsub.s32 0, %v68_v40  ;;  %v57_v42 = vld [vmem:[#allocation7] ss:$8 sm:$0x3]  ;;  %v2651_v43 = vsub.s32 1, %v68_v40  ;;  %vm2591_vm1 = vmmov 0  }
  0x45   :  { %s2592_s2 = smov [#allocation8]  }
  0x46   :  { %v70_v44 = vrot.slane %v57_v42, %v2649_v41  ;;  %v74_v45 = vrot.slane %v57_v42, %v2651_v43  ;;  %s2008_s23 = sshll.u32 %s2592_s2, 4  ;;  %s2009_s23 = int_to_ptr.vmem [resolvable:$true] %s2008_s23 }
  0x47   :  { %468 = vmatpush1.bf16.msra.mxu1 %v2256_v14  ;;  %s2553_s24 = scalar_lea.vmem %s2009_s23, 128  ;;  %p2558_p11 = scmp.lt.s32.totalorder %s2009_s23, %s2009_s23 }
  0x48   :  { %469 = vmatprep.subr.bf16.mxu1 %v2257_v15  ;;  %p2554_p10 = scmp.ne.s32.totalorder %s2009_s23, %s2553_s24  ;;  %p2559_p12 = scmp.lt.s32.totalorder %s2553_s24, %s2553_s24 }
  0x4a   :  { %p2560_p13 = por %p2559_p12, %p2558_p11 }
  0x4b   :  { %470 = vmatpush1.bf16.msra.mxu1 %v2259_v16 }
  0x4c   :  { %471 = vmatprep.subr.bf16.mxu1 %v2260_v17  ;;  %p2561_p0 = pnand %p2560_p13, %p2554_p10 }
  0x4f   :  { %472 = vmatpush1.bf16.msra.mxu1 %v2262_v18 }
  0x50   :  { %473 = vmatprep.subr.bf16.mxu1 %v2263_v19 }
  0x53   :  { %474 = vmatpush1.bf16.msra.mxu1 %v2265_v20 }
  0x54   :  { %475 = vmatprep.subr.bf16.mxu1 %v2266_v21 }
  0x57   :  { %476 = vmatpush1.bf16.msra.mxu1 %v2268_v22 }
  0x58   :  { %477 = vmatprep.subr.bf16.mxu1 %v2269_v23 }
  0x5b   :  { %478 = vmatpush1.bf16.msra.mxu1 %v2271_v24 }
  0x5c   :  { %479 = vmatprep.subr.bf16.mxu1 %v2272_v25 }
  0x5f   :  { %480 = vmatpush1.bf16.msra.mxu1 %v2274_v26  ;;  %v2589_v26 = vmov 1966171168  }
  0x60   :  { %481 = vmatprep.subr.bf16.mxu1 %v2275_v27  ;;  %v186_v27 = vunpack.c.l.s4 %v2589_v26  ;;  %v253_v26 = vld [vmem:[#allocation7 + $0x3] ss:$8 sm:$0x3] }
  0x63   :  { %482 = vmatpush1.bf16.msra.mxu1 %v2277_v28  ;;  %v187_v28 = vunpack.c.0.s8 %v186_v27  ;;  %v294_v27 = vrot.slane %v253_v26, %v2649_v41 }
  0x64   :  { %483 = vmatprep.subr.bf16.mxu1 %v2278_v29 }
  0x67   :  { %484 = vmatpush1.bf16.msra.mxu1 %v2280_v30  ;;  %v2655_v30 = vsub.s32 %v187_v28, %v68_v40  ;;  %v298_v28 = vrot.slane %v253_v26, %v2651_v43 }
  0x68   :  { %485 = vmatprep.subr.bf16.mxu1 %v2281_v31 }
  0x6b   :  { %486 = vmatpush1.bf16.msra.mxu1 %v2283_v32 }
  0x6c   :  { %487 = vmatprep.subr.bf16.mxu1 %v2284_v33 }
  0x6f   :  { %488 = vmatpush1.bf16.msra.mxu1 %v2286_v34  ;;  %v59_v34 = vld [vmem:[#allocation7 + $0x1] ss:$8 sm:$0x3] }
  0x70   :  { %489 = vmatprep.subr.bf16.mxu1 %v2287_v35 }
  0x73   :  { %490 = vmatpush1.bf16.msra.mxu1 %v2289_v36 }
  0x74   :  { %491 = vmatprep.subr.bf16.mxu1 %v2290_v37 }
  0x77   :  { %492 = vmatpush1.bf16.msra.mxu1 %v2292_v38 }
 0x113   :  { %v135_v46 = vpop.f32.mrb[0].mxu0 }
 0x114   :  { %v136_v47 = vadd.f32 %v135_v46, %v70_v44  ;;  %v137_v48 = vpop.f32.mrb[1].mxu0 }
 0x115   :  { %v138_v49 = vadd.f32 %v137_v48, %v74_v45  ;;  %v139_v50 = vpop.f32.mrb[2].mxu0  ;;  %v61_v48 = vld [vmem:[#allocation7 + $0x2] ss:$8 sm:$0x3] }
 0x116   :  { %v142_v51 = vrot.slane %v136_v47, 4  ;;  %v154_v52 = vmul.f32 %v136_v47, %v136_v47  ;;  %v140_v53 = vpop.f32.mrb[3].mxu0 }
 0x117   :  { %v148_v54 = vrot.slane %v138_v49, 4  ;;  %v155_v55 = vmul.f32 %v138_v49, %v138_v49 }
 0x118   :  { %v143_v56 = vadd.f32 %v142_v51, %v136_v47  ;;  %v156_v57 = vrot.slane %v154_v52, 4 }
 0x119   :  { %v149_v58 = vadd.f32 %v148_v54, %v138_v49  ;;  %v162_v59 = vrot.slane %v155_v55, 4 }
 0x11a   :  { %v144_v60 = vrot.slane %v143_v56, 2  ;;  %v157_v61 = vadd.f32 %v156_v57, %v154_v52 }
 0x11b   :  { %v150_v62 = vrot.slane %v149_v58, 2  ;;  %v163_v63 = vadd.f32 %v162_v59, %v155_v55 }
 0x11c   :  { %v145_v0 = vadd.f32 %v144_v60, %v143_v56  ;;  %v158_v1 = vrot.slane %v157_v61, 2  ;;  %v2298_v60 = vld [vmem:[#allocation5 + $0x134] ss:$8 sps:$4 sm:$0xff]  }
 0x11d   :  { %v151_v2 = vadd.f32 %v150_v62, %v149_v58  ;;  %v164_v3 = vrot.slane %v163_v63, 2  ;;  %v2301_v62 = vld [vmem:[#allocation5 + $0x144] ss:$8 sps:$4 sm:$0xff]  }
 0x11e   :  { %v146_v4 = vrot.slane %v145_v0, 1  ;;  %v159_v5 = vadd.f32 %v158_v1, %v157_v61  ;;  %v2296_v61 = vld [vmem:[#allocation5 + $0x130] ss:$8 sps:$4 sm:$0xff]  }
 0x11f   :  { %v165_v6 = vadd.f32 %v164_v3, %v163_v63  ;;  %v152_v7 = vrot.slane %v151_v2, 1  ;;  %v2299_v63 = vld [vmem:[#allocation5 + $0x140] ss:$8 sps:$4 sm:$0xff]   ;;  %v2302_v1 = vld [vmem:[#allocation5 + $0x150] ss:$8 sps:$4 sm:$0xff]  }
 0x120   :  { %v147_v8 = vadd.f32 %v146_v4, %v145_v0  ;;  %v160_v9 = vrot.slane %v159_v5, 1  ;;  %v2304_v0 = vld [vmem:[#allocation5 + $0x154] ss:$8 sps:$4 sm:$0xff]   ;;  %v2305_v3 = vld [vmem:[#allocation5 + $0x160] ss:$8 sps:$4 sm:$0xff]  }
 0x121   :  { %v166_v10 = vrot.slane %v165_v6, 1  ;;  %v153_v11 = vadd.f32 %v152_v7, %v151_v2  ;;  %v2307_v2 = vld [vmem:[#allocation5 + $0x164] ss:$8 sps:$4 sm:$0xff]   ;;  %v2310_v4 = vld [vmem:[#allocation5 + $0x174] ss:$8 sps:$4 sm:$0xff]  }
 0x122   :  { %v161_v12 = vadd.f32 %v160_v9, %v159_v5  ;;  %v168_v13 = vmul.f32 0.125, %v147_v8  ;;  %v2308_v5 = vld [vmem:[#allocation5 + $0x170] ss:$8 sps:$4 sm:$0xff]   ;;  %v2311_v7 = vld [vmem:[#allocation5 + $0x180] ss:$8 sps:$4 sm:$0xff]  }
 0x123   :  { %v167_v14 = vadd.f32 %v166_v10, %v165_v6  ;;  %v169_v15 = vmul.f32 0.125, %v153_v11  ;;  %v2313_v6 = vld [vmem:[#allocation5 + $0x184] ss:$8 sps:$4 sm:$0xff]   ;;  %v2316_v8 = vld [vmem:[#allocation5 + $0x194] ss:$8 sps:$4 sm:$0xff]  }
 0x124   :  { %v170_v16 = vmul.f32 0.125, %v161_v12  ;;  %v172_v17 = vmul.f32 %v168_v13, %v168_v13  ;;  %v2314_v9 = vld [vmem:[#allocation5 + $0x190] ss:$8 sps:$4 sm:$0xff]   ;;  %v2319_v10 = vld [vmem:[#allocation5 + $0x1a4] ss:$8 sps:$4 sm:$0xff]  }
 0x125   :  { %v171_v18 = vmul.f32 0.125, %v167_v14  ;;  %v173_v19 = vmul.f32 %v169_v15, %v169_v15  ;;  %v2317_v11 = vld [vmem:[#allocation5 + $0x1a0] ss:$8 sps:$4 sm:$0xff]   ;;  %v2322_v12 = vld [vmem:[#allocation5 + $0x1b4] ss:$8 sps:$4 sm:$0xff]  }
 0x126   :  { %v174_v20 = vsub.f32 %v170_v16, %v172_v17  ;;  %v2325_v14 = vld [vmem:[#allocation5 + $0x1c4] ss:$8 sps:$4 sm:$0xff]   ;;  %v2328_v16 = vld [vmem:[#allocation5 + $0x1d4] ss:$8 sps:$4 sm:$0xff]   ;;  %v2326_v17 = vld [vmem:[#allocation5 + $0x1d0] ss:$8 sps:$4 sm:$0xff]  }
 0x127   :  { %v175_v21 = vsub.f32 %v171_v18, %v173_v19  ;;  %v2331_v18 = vld [vmem:[#allocation5 + $0x1e4] ss:$8 sps:$4 sm:$0xff]   ;;  %v2329_v19 = vld [vmem:[#allocation5 + $0x1e0] ss:$8 sps:$4 sm:$0xff]  }
 0x128   :  { %v176_v22 = vmax.f32 %v174_v20, 0.0  ;;  %v2334_v20 = vld [vmem:[#allocation5 + $0x1f4] ss:$8 sps:$4 sm:$0xff]  }
 0x129   :  { %v177_v23 = vmax.f32 %v175_v21, 0.0  ;;  %v2332_v21 = vld [vmem:[#allocation5 + $0x1f0] ss:$8 sps:$4 sm:$0xff]  }
 0x12a   :  { %v178_v24 = vadd.f32 1e-05, %v176_v22  ;;  %v2337_v22 = vld [vmem:[#allocation5 + $0x204] ss:$8 sps:$4 sm:$0xff]  }
 0x12b   :  { %v179_v25 = vadd.f32 1e-05, %v177_v23  ;;  %v2335_v23 = vld [vmem:[#allocation5 + $0x200] ss:$8 sps:$4 sm:$0xff]  }
 0x12c   :  { %2461 = vrsqrt.f32 %v178_v24  ;;  %v2340_v24 = vld [vmem:[#allocation5 + $0x214] ss:$8 sps:$4 sm:$0xff]  }
 0x12d   :  { %2463 = vrsqrt.f32 %v179_v25  ;;  %v2338_v25 = vld [vmem:[#allocation5 + $0x210] ss:$8 sps:$4 sm:$0xff]  }
 0x136   :  { %v2462_v29 = vpop.eup %2461 }
 0x137   :  { %v2464_v31 = vpop.eup %2463 }
 0x138   :  { %v184_v32 = vcombine.low %v2462_v29, %v2464_v31 }
 0x13a   :  { %v191_v33 = vrot.slane %v184_v32, %v2655_v30 }
 0x13c   :  { %v198_v35 = vrot.slane %v191_v33, %v2655_v30 }
 0x13e   :  { %v200_v36 = vmul.f32 %v198_v35, %v59_v34 }
 0x140   :  { %v205_v37 = vrot.slane %v200_v36, %v2649_v41  ;;  %v209_v38 = vrot.slane %v200_v36, %v2651_v43 }
 0x142   :  { %v212_v39 = vmul.f32 %v205_v37, %v168_v13  ;;  %v213_v42 = vmul.f32 %v209_v38, %v169_v15  ;;  %v234_v44 = vmul.f32 %v209_v38, %v138_v49  ;;  %v233_v45 = vmul.f32 %v205_v37, %v136_v47  ;;  %v2295_v47 = vld [vmem:[#allocation5 + $0x124] ss:$8 sps:$4 sm:$0xff]   ;;  %v2293_v49 = vld [vmem:[#allocation5 + $0x120] ss:$8 sps:$4 sm:$0xff]   ;;  %v2320_v13 = vld [vmem:[#allocation5 + $0x1b0] ss:$8 sps:$4 sm:$0xff]  }
 0x143   :  { %821 = vmatprep.subr.bf16.mxu0 %v2295_v47  ;;  %v2323_v15 = vld [vmem:[#allocation5 + $0x1c0] ss:$8 sps:$4 sm:$0xff]  }
 0x144   :  { %v216_v46 = vcombine.low %v212_v39, %v213_v42  ;;  %822 = vmatpush1.bf16.msra.mxu0 %v2293_v49 }
 0x145   :  { %823 = vmatprep.subr.bf16.mxu0 %v2298_v60 }
 0x146   :  { %v223_v40 = vrot.slane %v216_v46, %v2655_v30 }
 0x148   :  { %v230_v50 = vrot.slane %v223_v40, %v2655_v30  ;;  %824 = vmatpush1.bf16.msra.mxu0 %v2296_v61 }
 0x149   :  { %825 = vmatprep.subr.bf16.mxu0 %v2301_v62 }
 0x14a   :  { %v232_v51 = vsub.f32 %v61_v48, %v230_v50 }
 0x14c   :  { %v243_v52 = vrot.slane %v232_v51, %v2651_v43  ;;  %v239_v53 = vrot.slane %v232_v51, %v2649_v41  ;;  %826 = vmatpush1.bf16.msra.mxu0 %v2299_v63 }
 0x14d   :  { %827 = vmatprep.subr.bf16.mxu0 %v2304_v0 }
 0x14e   :  { %v247_v54 = vadd.f32 %v243_v52, %v234_v44  ;;  %v246_v55 = vadd.f32 %v239_v53, %v233_v45 }
 0x150   :  { %v249_v56 = vmax.f32 %v247_v54, 0.0  ;;  %v248_v57 = vmax.f32 %v246_v55, 0.0  ;;  %828 = vmatpush1.bf16.msra.mxu0 %v2302_v1 }
 0x151   :  { %829 = vmatprep.subr.bf16.mxu0 %v2307_v2 }
 0x152   :  { %v251_v58 = vpack.c.bf16 %v249_v56, %v249_v56  ;;  %v250_v59 = vpack.c.bf16 %v248_v57, %v248_v57 }
 0x154   :  { %493 = vmatprep.mubr.bf16.mxu1 %v251_v58  ;;  %830 = vmatpush1.bf16.msra.mxu0 %v2305_v3 }
 0x155   :  { %494 = vmatmul.mubr.bf16.vlgmr.msra.gmra.mrb[0].mxu1 %v250_v59  ;;  %831 = vmatprep.subr.bf16.mxu0 %v2310_v4 }
 0x158   :  { %832 = vmatpush1.bf16.msra.mxu0 %v2308_v5 }
 0x159   :  { %833 = vmatprep.subr.bf16.mxu0 %v2313_v6 }
 0x15c   :  { %834 = vmatpush1.bf16.msra.mxu0 %v2311_v7 }
 0x15d   :  { %835 = vmatprep.subr.bf16.mxu0 %v2316_v8 }
 0x160   :  { %836 = vmatpush1.bf16.msra.mxu0 %v2314_v9 }
 0x161   :  { %837 = vmatprep.subr.bf16.mxu0 %v2319_v10 }
 0x164   :  { %838 = vmatpush1.bf16.msra.mxu0 %v2317_v11 }
 0x165   :  { %839 = vmatprep.subr.bf16.mxu0 %v2322_v12 }
 0x168   :  { %840 = vmatpush1.bf16.msra.mxu0 %v2320_v13 }
 0x169   :  { %841 = vmatprep.subr.bf16.mxu0 %v2325_v14 }
 0x16c   :  { %842 = vmatpush1.bf16.msra.mxu0 %v2323_v15 }
 0x16d   :  { %843 = vmatprep.subr.bf16.mxu0 %v2328_v16  ;;  %v255_v16 = vld [vmem:[#allocation7 + $0x4] ss:$8 sm:$0x3] }
 0x170   :  { %844 = vmatpush1.bf16.msra.mxu0 %v2326_v17 }
 0x171   :  { %845 = vmatprep.subr.bf16.mxu0 %v2331_v18 }
 0x174   :  { %846 = vmatpush1.bf16.msra.mxu0 %v2329_v19 }
 0x175   :  { %847 = vmatprep.subr.bf16.mxu0 %v2334_v20 }
 0x178   :  { %848 = vmatpush1.bf16.msra.mxu0 %v2332_v21 }
 0x179   :  { %849 = vmatprep.subr.bf16.mxu0 %v2337_v22 }
 0x17c   :  { %850 = vmatpush1.bf16.msra.mxu0 %v2335_v23 }
 0x17d   :  { %851 = vmatprep.subr.bf16.mxu0 %v2340_v24 }
 0x180   :  { %852 = vmatpush1.bf16.msra.mxu0 %v2338_v25 }
 0x228   :  { %v495_v29 = vpop.f32.mrb[0].mxu1 }
 0x229   :  { %v496_v31 = vadd.f32 %v495_v29, %v294_v27  ;;  %v497_v32 = vpop.f32.mrb[1].mxu1  ;;  %v257_v27 = vld [vmem:[#allocation7 + $0x5] ss:$8 sm:$0x3] }
 0x22a   :  { %v498_v33 = vadd.f32 %v497_v32, %v298_v28  ;;  %v499_v34 = vpop.f32.mrb[2].mxu1 }
 0x22b   :  { %v502_v35 = vrot.slane %v496_v31, 4  ;;  %v514_v36 = vmul.f32 %v496_v31, %v496_v31  ;;  %v500_v37 = vpop.f32.mrb[3].mxu1 }
 0x22c   :  { %v508_v38 = vrot.slane %v498_v33, 4  ;;  %v515_v39 = vmul.f32 %v498_v33, %v498_v33 }
 0x22d   :  { %v503_v42 = vadd.f32 %v502_v35, %v496_v31  ;;  %v516_v44 = vrot.slane %v514_v36, 4 }
 0x22e   :  { %v509_v45 = vadd.f32 %v508_v38, %v498_v33  ;;  %v522_v46 = vrot.slane %v515_v39, 4 }
 0x22f   :  { %v504_v40 = vrot.slane %v503_v42, 2  ;;  %v517_v48 = vadd.f32 %v516_v44, %v514_v36  ;;  %v2346_v44 = vld [vmem:[#allocation5 + $0x234] ss:$8 sps:$4 sm:$0xff]  }
 0x230   :  { %v510_v50 = vrot.slane %v509_v45, 2  ;;  %v523_v51 = vadd.f32 %v522_v46, %v515_v39  ;;  %v2349_v46 = vld [vmem:[#allocation5 + $0x244] ss:$8 sps:$4 sm:$0xff]  }
 0x231   :  { %v505_v52 = vadd.f32 %v504_v40, %v503_v42  ;;  %v518_v53 = vrot.slane %v517_v48, 2  ;;  %v2347_v40 = vld [vmem:[#allocation5 + $0x240] ss:$8 sps:$4 sm:$0xff]  }
 0x232   :  { %v511_v54 = vadd.f32 %v510_v50, %v509_v45  ;;  %v524_v55 = vrot.slane %v523_v51, 2  ;;  %v2344_v45 = vld [vmem:[#allocation5 + $0x230] ss:$8 sps:$4 sm:$0xff]  }
 0x233   :  { %v506_v56 = vrot.slane %v505_v52, 1  ;;  %v519_v57 = vadd.f32 %v518_v53, %v517_v48  ;;  %v2352_v48 = vld [vmem:[#allocation5 + $0x254] ss:$8 sps:$4 sm:$0xff]   ;;  %v2350_v50 = vld [vmem:[#allocation5 + $0x250] ss:$8 sps:$4 sm:$0xff]  }
 0x234   :  { %v512_v58 = vrot.slane %v511_v54, 1  ;;  %v525_v59 = vadd.f32 %v524_v55, %v523_v51  ;;  %v2355_v51 = vld [vmem:[#allocation5 + $0x264] ss:$8 sps:$4 sm:$0xff]   ;;  %v2358_v53 = vld [vmem:[#allocation5 + $0x274] ss:$8 sps:$4 sm:$0xff]  }
 0x235   :  { %v507_v47 = vadd.f32 %v506_v56, %v505_v52  ;;  %v520_v49 = vrot.slane %v519_v57, 1  ;;  %v2353_v52 = vld [vmem:[#allocation5 + $0x260] ss:$8 sps:$4 sm:$0xff]   ;;  %v2361_v55 = vld [vmem:[#allocation5 + $0x284] ss:$8 sps:$4 sm:$0xff]  }
 0x236   :  { %v513_v60 = vadd.f32 %v512_v58, %v511_v54  ;;  %v526_v61 = vrot.slane %v525_v59, 1  ;;  %v2356_v54 = vld [vmem:[#allocation5 + $0x270] ss:$8 sps:$4 sm:$0xff]   ;;  %v2359_v56 = vld [vmem:[#allocation5 + $0x280] ss:$8 sps:$4 sm:$0xff]  }
 0x237   :  { %v521_v62 = vadd.f32 %v520_v49, %v519_v57  ;;  %v528_v63 = vmul.f32 0.125, %v507_v47  ;;  %v2364_v57 = vld [vmem:[#allocation5 + $0x294] ss:$8 sps:$4 sm:$0xff]   ;;  %v2362_v58 = vld [vmem:[#allocation5 + $0x290] ss:$8 sps:$4 sm:$0xff]  }
 0x238   :  { %v527_v0 = vadd.f32 %v526_v61, %v525_v59  ;;  %v529_v1 = vmul.f32 0.125, %v513_v60  ;;  %v2367_v59 = vld [vmem:[#allocation5 + $0x2a4] ss:$8 sps:$4 sm:$0xff]   ;;  %v2365_v47 = vld [vmem:[#allocation5 + $0x2a0] ss:$8 sps:$4 sm:$0xff]  }
 0x239   :  { %v530_v2 = vmul.f32 0.125, %v521_v62  ;;  %v532_v3 = vmul.f32 %v528_v63, %v528_v63  ;;  %v2370_v49 = vld [vmem:[#allocation5 + $0x2b4] ss:$8 sps:$4 sm:$0xff]   ;;  %v2368_v60 = vld [vmem:[#allocation5 + $0x2b0] ss:$8 sps:$4 sm:$0xff]  }
 0x23a   :  { %v531_v4 = vmul.f32 0.125, %v527_v0  ;;  %v533_v5 = vmul.f32 %v529_v1, %v529_v1  ;;  %v2373_v61 = vld [vmem:[#allocation5 + $0x2c4] ss:$8 sps:$4 sm:$0xff]   ;;  %v2371_v62 = vld [vmem:[#allocation5 + $0x2c0] ss:$8 sps:$4 sm:$0xff]  }
 0x23b   :  { %v534_v6 = vsub.f32 %v530_v2, %v532_v3  ;;  %v2374_v0 = vld [vmem:[#allocation5 + $0x2d0] ss:$8 sps:$4 sm:$0xff]   ;;  %v2377_v2 = vld [vmem:[#allocation5 + $0x2e0] ss:$8 sps:$4 sm:$0xff]   ;;  %v2382_v3 = vld [vmem:[#allocation5 + $0x2f4] ss:$8 sps:$4 sm:$0xff]  }
 0x23c   :  { %v535_v7 = vsub.f32 %v531_v4, %v533_v5  ;;  %v2380_v4 = vld [vmem:[#allocation5 + $0x2f0] ss:$8 sps:$4 sm:$0xff]   ;;  %v2385_v5 = vld [vmem:[#allocation5 + $0x304] ss:$8 sps:$4 sm:$0xff]  }
 0x23d   :  { %v536_v8 = vmax.f32 %v534_v6, 0.0  ;;  %v2383_v6 = vld [vmem:[#allocation5 + $0x300] ss:$8 sps:$4 sm:$0xff]  }
 0x23e   :  { %v537_v9 = vmax.f32 %v535_v7, 0.0  ;;  %v2388_v7 = vld [vmem:[#allocation5 + $0x314] ss:$8 sps:$4 sm:$0xff]  }
 0x23f   :  { %v538_v10 = vadd.f32 1e-05, %v536_v8  ;;  %v2386_v8 = vld [vmem:[#allocation5 + $0x310] ss:$8 sps:$4 sm:$0xff]  }
 0x240   :  { %v539_v11 = vadd.f32 1e-05, %v537_v9  ;;  %v613_v9 = vld [vmem:[#allocation7 + $0x6] ss:$8 sm:$0x3] }
 0x241   :  { %2465 = vrsqrt.f32 %v538_v10  ;;  %v654_v10 = vrot.slane %v613_v9, %v2649_v41 }
 0x242   :  { %2467 = vrsqrt.f32 %v539_v11  ;;  %v658_v11 = vrot.slane %v613_v9, %v2651_v43 }
 0x24b   :  { %v2466_v12 = vpop.eup %2465 }
 0x24c   :  { %v2468_v13 = vpop.eup %2467 }
 0x24d   :  { %v544_v14 = vcombine.low %v2466_v12, %v2468_v13 }
 0x24f   :  { %v551_v15 = vrot.slane %v544_v14, %v2655_v30 }
 0x251   :  { %v558_v17 = vrot.slane %v551_v15, %v2655_v30 }
 0x253   :  { %v560_v18 = vmul.f32 %v558_v17, %v255_v16 }
 0x255   :  { %v565_v19 = vrot.slane %v560_v18, %v2649_v41  ;;  %v569_v20 = vrot.slane %v560_v18, %v2651_v43 }
 0x257   :  { %v572_v21 = vmul.f32 %v565_v19, %v528_v63  ;;  %v573_v22 = vmul.f32 %v569_v20, %v529_v1  ;;  %v594_v23 = vmul.f32 %v569_v20, %v498_v33  ;;  %v593_v24 = vmul.f32 %v565_v19, %v496_v31  ;;  %v2343_v31 = vld [vmem:[#allocation5 + $0x224] ss:$8 sps:$4 sm:$0xff]   ;;  %v2341_v33 = vld [vmem:[#allocation5 + $0x220] ss:$8 sps:$4 sm:$0xff]   ;;  %v2376_v63 = vld [vmem:[#allocation5 + $0x2d4] ss:$8 sps:$4 sm:$0xff]  }
 0x258   :  { %1181 = vmatprep.subr.bf16.mxu1 %v2343_v31  ;;  %v2379_v1 = vld [vmem:[#allocation5 + $0x2e4] ss:$8 sps:$4 sm:$0xff]  }
 0x259   :  { %v576_v25 = vcombine.low %v572_v21, %v573_v22  ;;  %1182 = vmatpush1.bf16.msra.mxu1 %v2341_v33 }
 0x25a   :  { %1183 = vmatprep.subr.bf16.mxu1 %v2346_v44 }
 0x25b   :  { %v583_v26 = vrot.slane %v576_v25, %v2655_v30 }
 0x25d   :  { %v590_v28 = vrot.slane %v583_v26, %v2655_v30  ;;  %1184 = vmatpush1.bf16.msra.mxu1 %v2344_v45 }
 0x25e   :  { %1185 = vmatprep.subr.bf16.mxu1 %v2349_v46 }
 0x25f   :  { %v592_v29 = vsub.f32 %v257_v27, %v590_v28 }
 0x261   :  { %v603_v32 = vrot.slane %v592_v29, %v2651_v43  ;;  %v599_v34 = vrot.slane %v592_v29, %v2649_v41  ;;  %1186 = vmatpush1.bf16.msra.mxu1 %v2347_v40 }
 0x262   :  { %1187 = vmatprep.subr.bf16.mxu1 %v2352_v48 }
 0x263   :  { %v607_v35 = vadd.f32 %v603_v32, %v594_v23  ;;  %v606_v36 = vadd.f32 %v599_v34, %v593_v24 }
 0x265   :  { %v609_v37 = vmax.f32 %v607_v35, 0.0  ;;  %v608_v38 = vmax.f32 %v606_v36, 0.0  ;;  %1188 = vmatpush1.bf16.msra.mxu1 %v2350_v50 }
 0x266   :  { %1189 = vmatprep.subr.bf16.mxu1 %v2355_v51 }
 0x267   :  { %v611_v39 = vpack.c.bf16 %v609_v37, %v609_v37  ;;  %v610_v42 = vpack.c.bf16 %v608_v38, %v608_v38 }
 0x269   :  { %853 = vmatprep.mubr.bf16.mxu0 %v611_v39  ;;  %1190 = vmatpush1.bf16.msra.mxu1 %v2353_v52 }
 0x26a   :  { %854 = vmatmul.mubr.bf16.vlgmr.msra.gmra.mrb[4].mxu0 %v610_v42  ;;  %1191 = vmatprep.subr.bf16.mxu1 %v2358_v53 }
 0x26d   :  { %1192 = vmatpush1.bf16.msra.mxu1 %v2356_v54 }
 0x26e   :  { %1193 = vmatprep.subr.bf16.mxu1 %v2361_v55 }
 0x271   :  { %1194 = vmatpush1.bf16.msra.mxu1 %v2359_v56 }
 0x272   :  { %1195 = vmatprep.subr.bf16.mxu1 %v2364_v57 }
 0x275   :  { %1196 = vmatpush1.bf16.msra.mxu1 %v2362_v58 }
 0x276   :  { %1197 = vmatprep.subr.bf16.mxu1 %v2367_v59 }
 0x279   :  { %1198 = vmatpush1.bf16.msra.mxu1 %v2365_v47 }
 0x27a   :  { %1199 = vmatprep.subr.bf16.mxu1 %v2370_v49 }
 0x27d   :  { %1200 = vmatpush1.bf16.msra.mxu1 %v2368_v60 }
 0x27e   :  { %1201 = vmatprep.subr.bf16.mxu1 %v2373_v61 }
 0x281   :  { %1202 = vmatpush1.bf16.msra.mxu1 %v2371_v62 }
 0x282   :  { %1203 = vmatprep.subr.bf16.mxu1 %v2376_v63  ;;  %v615_v63 = vld [vmem:[#allocation7 + $0x7] ss:$8 sm:$0x3] }
 0x285   :  { %1204 = vmatpush1.bf16.msra.mxu1 %v2374_v0 }
 0x286   :  { %1205 = vmatprep.subr.bf16.mxu1 %v2379_v1 }
 0x289   :  { %1206 = vmatpush1.bf16.msra.mxu1 %v2377_v2 }
 0x28a   :  { %1207 = vmatprep.subr.bf16.mxu1 %v2382_v3 }
 0x28d   :  { %1208 = vmatpush1.bf16.msra.mxu1 %v2380_v4 }
 0x28e   :  { %1209 = vmatprep.subr.bf16.mxu1 %v2385_v5 }
 0x291   :  { %1210 = vmatpush1.bf16.msra.mxu1 %v2383_v6 }
 0x292   :  { %1211 = vmatprep.subr.bf16.mxu1 %v2388_v7 }
 0x295   :  { %1212 = vmatpush1.bf16.msra.mxu1 %v2386_v8 }
 0x33d   :  { %v855_v12 = vpop.f32.mrb[4].mxu0 }
 0x33e   :  { %v856_v13 = vadd.f32 %v855_v12, %v654_v10  ;;  %v857_v14 = vpop.f32.mrb[5].mxu0  ;;  %v617_v10 = vld [vmem:[#allocation7 + $0x10] ss:$8 sm:$0x3] }
 0x33f   :  { %v858_v15 = vadd.f32 %v857_v14, %v658_v11  ;;  %v859_v16 = vpop.f32.mrb[6].mxu0 }
 0x340   :  { %v862_v17 = vrot.slane %v856_v13, 4  ;;  %v874_v18 = vmul.f32 %v856_v13, %v856_v13  ;;  %v860_v19 = vpop.f32.mrb[7].mxu0 }
 0x341   :  { %v868_v20 = vrot.slane %v858_v15, 4  ;;  %v875_v21 = vmul.f32 %v858_v15, %v858_v15 }
 0x342   :  { %v863_v22 = vadd.f32 %v862_v17, %v856_v13  ;;  %v876_v23 = vrot.slane %v874_v18, 4 }
 0x343   :  { %v869_v24 = vadd.f32 %v868_v20, %v858_v15  ;;  %v882_v25 = vrot.slane %v875_v21, 4 }
 0x344   :  { %v864_v26 = vrot.slane %v863_v22, 2  ;;  %v877_v27 = vadd.f32 %v876_v23, %v874_v18  ;;  %v2394_v23 = vld [vmem:[#allocation5 + $0x334] ss:$8 sps:$4 sm:$0xff]  }
 0x345   :  { %v870_v28 = vrot.slane %v869_v24, 2  ;;  %v883_v29 = vadd.f32 %v882_v25, %v875_v21  ;;  %v2397_v25 = vld [vmem:[#allocation5 + $0x344] ss:$8 sps:$4 sm:$0xff]  }
 0x346   :  { %v865_v32 = vadd.f32 %v864_v26, %v863_v22  ;;  %v878_v34 = vrot.slane %v877_v27, 2  ;;  %v2395_v26 = vld [vmem:[#allocation5 + $0x340] ss:$8 sps:$4 sm:$0xff]  }
 0x347   :  { %v871_v35 = vadd.f32 %v870_v28, %v869_v24  ;;  %v884_v36 = vrot.slane %v883_v29, 2  ;;  %v2392_v24 = vld [vmem:[#allocation5 + $0x330] ss:$8 sps:$4 sm:$0xff]  }
 0x348   :  { %v866_v37 = vrot.slane %v865_v32, 1  ;;  %v879_v38 = vadd.f32 %v878_v34, %v877_v27  ;;  %v2400_v27 = vld [vmem:[#allocation5 + $0x354] ss:$8 sps:$4 sm:$0xff]   ;;  %v2398_v28 = vld [vmem:[#allocation5 + $0x350] ss:$8 sps:$4 sm:$0xff]  }
 0x349   :  { %v872_v39 = vrot.slane %v871_v35, 1  ;;  %v885_v42 = vadd.f32 %v884_v36, %v883_v29  ;;  %v2403_v29 = vld [vmem:[#allocation5 + $0x364] ss:$8 sps:$4 sm:$0xff]   ;;  %v2406_v34 = vld [vmem:[#allocation5 + $0x374] ss:$8 sps:$4 sm:$0xff]  }
 0x34a   :  { %v867_v31 = vadd.f32 %v866_v37, %v865_v32  ;;  %v880_v33 = vrot.slane %v879_v38, 1  ;;  %v2401_v32 = vld [vmem:[#allocation5 + $0x360] ss:$8 sps:$4 sm:$0xff]   ;;  %v2409_v36 = vld [vmem:[#allocation5 + $0x384] ss:$8 sps:$4 sm:$0xff]  }
 0x34b   :  { %v873_v44 = vadd.f32 %v872_v39, %v871_v35  ;;  %v886_v45 = vrot.slane %v885_v42, 1  ;;  %v2404_v35 = vld [vmem:[#allocation5 + $0x370] ss:$8 sps:$4 sm:$0xff]   ;;  %v2407_v37 = vld [vmem:[#allocation5 + $0x380] ss:$8 sps:$4 sm:$0xff]  }
 0x34c   :  { %v881_v46 = vadd.f32 %v880_v33, %v879_v38  ;;  %v888_v40 = vmul.f32 0.125, %v867_v31  ;;  %v2412_v38 = vld [vmem:[#allocation5 + $0x394] ss:$8 sps:$4 sm:$0xff]   ;;  %v2410_v39 = vld [vmem:[#allocation5 + $0x390] ss:$8 sps:$4 sm:$0xff]  }
 0x34d   :  { %v887_v48 = vadd.f32 %v886_v45, %v885_v42  ;;  %v889_v50 = vmul.f32 0.125, %v873_v44  ;;  %v2415_v42 = vld [vmem:[#allocation5 + $0x3a4] ss:$8 sps:$4 sm:$0xff]   ;;  %v2413_v31 = vld [vmem:[#allocation5 + $0x3a0] ss:$8 sps:$4 sm:$0xff]  }
 0x34e   :  { %v890_v51 = vmul.f32 0.125, %v881_v46  ;;  %v892_v52 = vmul.f32 %v888_v40, %v888_v40  ;;  %v2418_v33 = vld [vmem:[#allocation5 + $0x3b4] ss:$8 sps:$4 sm:$0xff]   ;;  %v2416_v44 = vld [vmem:[#allocation5 + $0x3b0] ss:$8 sps:$4 sm:$0xff]  }
 0x34f   :  { %v891_v53 = vmul.f32 0.125, %v887_v48  ;;  %v893_v54 = vmul.f32 %v889_v50, %v889_v50  ;;  %v2421_v45 = vld [vmem:[#allocation5 + $0x3c4] ss:$8 sps:$4 sm:$0xff]   ;;  %v2419_v46 = vld [vmem:[#allocation5 + $0x3c0] ss:$8 sps:$4 sm:$0xff]  }
 0x350   :  { %v894_v55 = vsub.f32 %v890_v51, %v892_v52  ;;  %v2422_v48 = vld [vmem:[#allocation5 + $0x3d0] ss:$8 sps:$4 sm:$0xff]   ;;  %v2425_v51 = vld [vmem:[#allocation5 + $0x3e0] ss:$8 sps:$4 sm:$0xff]   ;;  %v2430_v52 = vld [vmem:[#allocation5 + $0x3f4] ss:$8 sps:$4 sm:$0xff]  }
 0x351   :  { %v895_v56 = vsub.f32 %v891_v53, %v893_v54  ;;  %v2428_v53 = vld [vmem:[#allocation5 + $0x3f0] ss:$8 sps:$4 sm:$0xff]   ;;  %v2433_v54 = vld [vmem:[#allocation5 + $0x404] ss:$8 sps:$4 sm:$0xff]  }
 0x352   :  { %v896_v57 = vmax.f32 %v894_v55, 0.0  ;;  %v2431_v55 = vld [vmem:[#allocation5 + $0x400] ss:$8 sps:$4 sm:$0xff]  }
 0x353   :  { %v897_v58 = vmax.f32 %v895_v56, 0.0  ;;  %v2436_v56 = vld [vmem:[#allocation5 + $0x414] ss:$8 sps:$4 sm:$0xff]  }
 0x354   :  { %v898_v59 = vadd.f32 1e-05, %v896_v57  ;;  %v2434_v57 = vld [vmem:[#allocation5 + $0x410] ss:$8 sps:$4 sm:$0xff]  }
 0x355   :  { %v899_v47 = vadd.f32 1e-05, %v897_v58  ;;  %v973_v58 = vld [vmem:[#allocation7 + $0x11] ss:$8 sm:$0x3] }
 0x356   :  { %2469 = vrsqrt.f32 %v898_v59  ;;  %v1014_v59 = vrot.slane %v973_v58, %v2649_v41 }
 0x357   :  { %2471 = vrsqrt.f32 %v899_v47  ;;  %v1018_v47 = vrot.slane %v973_v58, %v2651_v43 }
 0x360   :  { %v2470_v49 = vpop.eup %2469 }
 0x361   :  { %v2472_v60 = vpop.eup %2471 }
 0x362   :  { %v904_v61 = vcombine.low %v2470_v49, %v2472_v60 }
 0x364   :  { %v911_v62 = vrot.slane %v904_v61, %v2655_v30 }
 0x366   :  { %v918_v0 = vrot.slane %v911_v62, %v2655_v30 }
 0x368   :  { %v920_v1 = vmul.f32 %v918_v0, %v615_v63 }
 0x36a   :  { %v925_v2 = vrot.slane %v920_v1, %v2649_v41  ;;  %v929_v3 = vrot.slane %v920_v1, %v2651_v43 }
 0x36c   :  { %v932_v4 = vmul.f32 %v925_v2, %v888_v40  ;;  %v933_v5 = vmul.f32 %v929_v3, %v889_v50  ;;  %v954_v6 = vmul.f32 %v929_v3, %v858_v15  ;;  %v953_v7 = vmul.f32 %v925_v2, %v856_v13  ;;  %v2391_v13 = vld [vmem:[#allocation5 + $0x324] ss:$8 sps:$4 sm:$0xff]   ;;  %v2389_v15 = vld [vmem:[#allocation5 + $0x320] ss:$8 sps:$4 sm:$0xff]   ;;  %v2424_v40 = vld [vmem:[#allocation5 + $0x3d4] ss:$8 sps:$4 sm:$0xff]  }
 0x36d   :  { %1541 = vmatprep.subr.bf16.mxu0 %v2391_v13  ;;  %v2427_v50 = vld [vmem:[#allocation5 + $0x3e4] ss:$8 sps:$4 sm:$0xff]  }
 0x36e   :  { %v936_v8 = vcombine.low %v932_v4, %v933_v5  ;;  %1542 = vmatpush1.bf16.msra.mxu0 %v2389_v15 }
 0x36f   :  { %1543 = vmatprep.subr.bf16.mxu0 %v2394_v23 }
 0x370   :  { %v943_v9 = vrot.slane %v936_v8, %v2655_v30 }
 0x372   :  { %v950_v11 = vrot.slane %v943_v9, %v2655_v30  ;;  %1544 = vmatpush1.bf16.msra.mxu0 %v2392_v24 }
 0x373   :  { %1545 = vmatprep.subr.bf16.mxu0 %v2397_v25 }
 0x374   :  { %v952_v12 = vsub.f32 %v617_v10, %v950_v11 }
 0x376   :  { %v963_v14 = vrot.slane %v952_v12, %v2651_v43  ;;  %v959_v16 = vrot.slane %v952_v12, %v2649_v41  ;;  %1546 = vmatpush1.bf16.msra.mxu0 %v2395_v26 }
 0x377   :  { %1547 = vmatprep.subr.bf16.mxu0 %v2400_v27 }
 0x378   :  { %v967_v17 = vadd.f32 %v963_v14, %v954_v6  ;;  %v966_v18 = vadd.f32 %v959_v16, %v953_v7 }
 0x37a   :  { %v969_v19 = vmax.f32 %v967_v17, 0.0  ;;  %v968_v20 = vmax.f32 %v966_v18, 0.0  ;;  %1548 = vmatpush1.bf16.msra.mxu0 %v2398_v28 }
 0x37b   :  { %1549 = vmatprep.subr.bf16.mxu0 %v2403_v29 }
 0x37c   :  { %v971_v21 = vpack.c.bf16 %v969_v19, %v969_v19  ;;  %v970_v22 = vpack.c.bf16 %v968_v20, %v968_v20 }
 0x37e   :  { %1213 = vmatprep.mubr.bf16.mxu1 %v971_v21  ;;  %1550 = vmatpush1.bf16.msra.mxu0 %v2401_v32 }
 0x37f   :  { %1214 = vmatmul.mubr.bf16.vlgmr.msra.gmra.mrb[4].mxu1 %v970_v22  ;;  %1551 = vmatprep.subr.bf16.mxu0 %v2406_v34 }
 0x382   :  { %1552 = vmatpush1.bf16.msra.mxu0 %v2404_v35 }
 0x383   :  { %1553 = vmatprep.subr.bf16.mxu0 %v2409_v36 }
 0x386   :  { %1554 = vmatpush1.bf16.msra.mxu0 %v2407_v37 }
 0x387   :  { %1555 = vmatprep.subr.bf16.mxu0 %v2412_v38 }
 0x38a   :  { %1556 = vmatpush1.bf16.msra.mxu0 %v2410_v39 }
 0x38b   :  { %1557 = vmatprep.subr.bf16.mxu0 %v2415_v42 }
 0x38e   :  { %1558 = vmatpush1.bf16.msra.mxu0 %v2413_v31 }
 0x38f   :  { %1559 = vmatprep.subr.bf16.mxu0 %v2418_v33 }
 0x392   :  { %1560 = vmatpush1.bf16.msra.mxu0 %v2416_v44 }
 0x393   :  { %1561 = vmatprep.subr.bf16.mxu0 %v2421_v45 }
 0x396   :  { %1562 = vmatpush1.bf16.msra.mxu0 %v2419_v46 }
 0x397   :  { %1563 = vmatprep.subr.bf16.mxu0 %v2424_v40  ;;  %v975_v40 = vld [vmem:[#allocation7 + $0x12] ss:$8 sm:$0x3] }
 0x39a   :  { %1564 = vmatpush1.bf16.msra.mxu0 %v2422_v48 }
 0x39b   :  { %1565 = vmatprep.subr.bf16.mxu0 %v2427_v50 }
 0x39e   :  { %1566 = vmatpush1.bf16.msra.mxu0 %v2425_v51 }
 0x39f   :  { %1567 = vmatprep.subr.bf16.mxu0 %v2430_v52 }
 0x3a2   :  { %1568 = vmatpush1.bf16.msra.mxu0 %v2428_v53 }
 0x3a3   :  { %1569 = vmatprep.subr.bf16.mxu0 %v2433_v54 }
 0x3a6   :  { %1570 = vmatpush1.bf16.msra.mxu0 %v2431_v55 }
 0x3a7   :  { %1571 = vmatprep.subr.bf16.mxu0 %v2436_v56 }
 0x3aa   :  { %1572 = vmatpush1.bf16.msra.mxu0 %v2434_v57 }
 0x452   :  { %v1215_v49 = vpop.f32.mrb[4].mxu1 }
 0x453   :  { %v1216_v60 = vadd.f32 %v1215_v49, %v1014_v59  ;;  %v1217_v61 = vpop.f32.mrb[5].mxu1  ;;  %v977_v59 = vld [vmem:[#allocation7 + $0x13] ss:$8 sm:$0x3] }
 0x454   :  { %v1218_v62 = vadd.f32 %v1217_v61, %v1018_v47  ;;  %v1219_v63 = vpop.f32.mrb[6].mxu1 }
 0x455   :  { %v1222_v0 = vrot.slane %v1216_v60, 4  ;;  %v1234_v1 = vmul.f32 %v1216_v60, %v1216_v60  ;;  %v1220_v2 = vpop.f32.mrb[7].mxu1 }
 0x456   :  { %v1228_v3 = vrot.slane %v1218_v62, 4  ;;  %v1235_v4 = vmul.f32 %v1218_v62, %v1218_v62 }
 0x457   :  { %v1223_v5 = vadd.f32 %v1222_v0, %v1216_v60  ;;  %v1236_v6 = vrot.slane %v1234_v1, 4 }
 0x458   :  { %v1229_v7 = vadd.f32 %v1228_v3, %v1218_v62  ;;  %v1242_v8 = vrot.slane %v1235_v4, 4 }
 0x459   :  { %v1224_v9 = vrot.slane %v1223_v5, 2  ;;  %v1237_v10 = vadd.f32 %v1236_v6, %v1234_v1  ;;  %v2439_v6 = vld [vmem:[#allocation5 + $0x4b0] ss:$8 sps:$4 sm:$0xff]  }
 0x45a   :  { %v1230_v11 = vrot.slane %v1229_v7, 2  ;;  %v1243_v12 = vadd.f32 %v1242_v8, %v1235_v4  ;;  %v2441_v8 = vld [vmem:[#allocation5 + $0x4c0] ss:$8 sps:$4 sm:$0xff]  }
 0x45b   :  { %v1225_v14 = vadd.f32 %v1224_v9, %v1223_v5  ;;  %v1238_v16 = vrot.slane %v1237_v10, 2  ;;  %v2442_v9 = vld [vmem:[#allocation5 + $0x440] ss:$8 sps:$4 sm:$0xff]  }
 0x45c   :  { %v1231_v17 = vadd.f32 %v1230_v11, %v1229_v7  ;;  %v1244_v18 = vrot.slane %v1243_v12, 2  ;;  %v2440_v7 = vld [vmem:[#allocation5 + $0x430] ss:$8 sps:$4 sm:$0xff]  }
 0x45d   :  { %v1226_v19 = vrot.slane %v1225_v14, 1  ;;  %v1239_v20 = vadd.f32 %v1238_v16, %v1237_v10  ;;  %v2443_v10 = vld [vmem:[#allocation5 + $0x4d0] ss:$8 sps:$4 sm:$0xff]  }
 0x45e   :  { %v1232_v21 = vrot.slane %v1231_v17, 1  ;;  %v1245_v22 = vadd.f32 %v1244_v18, %v1243_v12  ;;  %v2444_v11 = vld [vmem:[#allocation5 + $0x450] ss:$8 sps:$4 sm:$0xff]   ;;  %v2445_v12 = vld [vmem:[#allocation5 + $0x4e0] ss:$8 sps:$4 sm:$0xff]  }
 0x45f   :  { %v1227_v13 = vadd.f32 %v1226_v19, %v1225_v14  ;;  %v1240_v15 = vrot.slane %v1239_v20, 1  ;;  %v2446_v14 = vld [vmem:[#allocation5 + $0x460] ss:$8 sps:$4 sm:$0xff]   ;;  %v2447_v16 = vld [vmem:[#allocation5 + $0x4f0] ss:$8 sps:$4 sm:$0xff]  }
 0x460   :  { %v1233_v23 = vadd.f32 %v1232_v21, %v1231_v17  ;;  %v1246_v24 = vrot.slane %v1245_v22, 1  ;;  %v2448_v17 = vld [vmem:[#allocation5 + $0x470] ss:$8 sps:$4 sm:$0xff]   ;;  %v2449_v18 = vld [vmem:[#allocation5 + $0x500] ss:$8 sps:$4 sm:$0xff]  }
 0x461   :  { %v1241_v25 = vadd.f32 %v1240_v15, %v1239_v20  ;;  %v1248_v26 = vmul.f32 0.125, %v1227_v13  ;;  %v2450_v19 = vld [vmem:[#allocation5 + $0x480] ss:$8 sps:$4 sm:$0xff]   ;;  %v2451_v20 = vld [vmem:[#allocation5 + $0x510] ss:$8 sps:$4 sm:$0xff]  }
 0x462   :  { %v1247_v27 = vadd.f32 %v1246_v24, %v1245_v22  ;;  %v1249_v28 = vmul.f32 0.125, %v1233_v23  ;;  %v2452_v21 = vld [vmem:[#allocation5 + $0x490] ss:$8 sps:$4 sm:$0xff]   ;;  %v1333_v22 = vld [vmem:[#allocation7 + $0x14] ss:$8 sm:$0x3] }
 0x463   :  { %v1250_v29 = vmul.f32 0.125, %v1241_v25  ;;  %v1252_v32 = vmul.f32 %v1248_v26, %v1248_v26  ;;  %v1374_v13 = vrot.slane %v1333_v22, %v2649_v41  ;;  %v1378_v15 = vrot.slane %v1333_v22, %v2651_v43 }
 0x464   :  { %v1251_v34 = vmul.f32 0.125, %v1247_v27  ;;  %v1253_v35 = vmul.f32 %v1249_v28, %v1249_v28 }
 0x465   :  { %v1254_v36 = vsub.f32 %v1250_v29, %v1252_v32 }
 0x466   :  { %v1255_v37 = vsub.f32 %v1251_v34, %v1253_v35 }
 0x467   :  { %v1256_v38 = vmax.f32 %v1254_v36, 0.0 }
 0x468   :  { %v1257_v39 = vmax.f32 %v1255_v37, 0.0 }
 0x469   :  { %v1258_v42 = vadd.f32 1e-05, %v1256_v38 }
 0x46a   :  { %v1259_v31 = vadd.f32 1e-05, %v1257_v39 }
 0x46b   :  { %2473 = vrsqrt.f32 %v1258_v42 }
 0x46c   :  { %2475 = vrsqrt.f32 %v1259_v31 }
 0x475   :  { %v2474_v33 = vpop.eup %2473 }
 0x476   :  { %v2476_v44 = vpop.eup %2475 }
 0x477   :  { %v1264_v45 = vcombine.low %v2474_v33, %v2476_v44 }
 0x479   :  { %v1271_v46 = vrot.slane %v1264_v45, %v2655_v30 }
 0x47b   :  { %v1278_v48 = vrot.slane %v1271_v46, %v2655_v30 }
 0x47d   :  { %v1280_v50 = vmul.f32 %v1278_v48, %v975_v40 }
 0x47f   :  { %v1285_v51 = vrot.slane %v1280_v50, %v2649_v41  ;;  %v1289_v52 = vrot.slane %v1280_v50, %v2651_v43 }
 0x481   :  { %v1292_v53 = vmul.f32 %v1285_v51, %v1248_v26  ;;  %v1293_v54 = vmul.f32 %v1289_v52, %v1249_v28  ;;  %v1314_v55 = vmul.f32 %v1289_v52, %v1218_v62  ;;  %v1313_v56 = vmul.f32 %v1285_v51, %v1216_v60  ;;  %v2437_v60 = vld [vmem:[#allocation5 + $0x4a0] ss:$8 sps:$4 sm:$0xff]  }
 0x482   :  { %v2438_v62 = vld [vmem:[#allocation5 + $0x420] ss:$8 sps:$4 sm:$0xff]   ;;  %2176 = vmatprep.subr.bf16.mxu1 %v2437_v60 }
 0x483   :  { %v1296_v57 = vcombine.low %v1292_v53, %v1293_v54  ;;  %2177 = vmatpush3.bf16.msra.mxu1 %v2438_v62 }
 0x484   :  { %2178 = vmatprep.subr.bf16.mxu1 %v2439_v6 }
 0x485   :  { %v1303_v58 = vrot.slane %v1296_v57, %v2655_v30 }
 0x487   :  { %v1310_v47 = vrot.slane %v1303_v58, %v2655_v30  ;;  %2179 = vmatpush3.bf16.msra.mxu1 %v2440_v7 }
 0x488   :  { %2180 = vmatprep.subr.bf16.mxu1 %v2441_v8 }
 0x489   :  { %v1312_v49 = vsub.f32 %v977_v59, %v1310_v47 }
 0x48b   :  { %v1323_v61 = vrot.slane %v1312_v49, %v2651_v43  ;;  %v1319_v63 = vrot.slane %v1312_v49, %v2649_v41  ;;  %2181 = vmatpush3.bf16.msra.mxu1 %v2442_v9 }
 0x48c   :  { %2182 = vmatprep.subr.bf16.mxu1 %v2443_v10  ;;  %v1335_v10 = vld [vmem:[#allocation7 + $0x15] ss:$8 sm:$0x3] }
 0x48d   :  { %v1327_v0 = vadd.f32 %v1323_v61, %v1314_v55  ;;  %v1326_v1 = vadd.f32 %v1319_v63, %v1313_v56 }
 0x48f   :  { %v1329_v2 = vmax.f32 %v1327_v0, 0.0  ;;  %v1328_v3 = vmax.f32 %v1326_v1, 0.0  ;;  %2183 = vmatpush3.bf16.msra.mxu1 %v2444_v11 }
 0x490   :  { %2184 = vmatprep.subr.bf16.mxu1 %v2445_v12 }
 0x491   :  { %v1331_v4 = vpack.c.bf16 %v1329_v2, %v1329_v2  ;;  %v1330_v5 = vpack.c.bf16 %v1328_v3, %v1328_v3 }
 0x493   :  { %1573 = vmatprep.mubr.bf16.mxu0 %v1331_v4  ;;  %2185 = vmatpush3.bf16.msra.mxu1 %v2446_v14 }
 0x494   :  { %1574 = vmatmul.mubr.bf16.vlgmr.msra.gmra.mrb[8].mxu0 %v1330_v5  ;;  %2186 = vmatprep.subr.bf16.mxu1 %v2447_v16 }
 0x497   :  { %2187 = vmatpush3.bf16.msra.mxu1 %v2448_v17 }
 0x498   :  { %2188 = vmatprep.subr.bf16.mxu1 %v2449_v18 }
 0x49b   :  { %2189 = vmatpush3.bf16.msra.mxu1 %v2450_v19 }
 0x49c   :  { %2190 = vmatprep.subr.bf16.mxu1 %v2451_v20 }
 0x49f   :  { %2191 = vmatpush3.bf16.msra.mxu1 %v2452_v21 }
 0x567   :  { %v1575_v23 = vpop.f32.mrb[8].mxu0 }
 0x568   :  { %v1576_v24 = vadd.f32 %v1575_v23, %v1374_v13  ;;  %v1577_v25 = vpop.f32.mrb[9].mxu0  ;;  %v1337_v13 = vld [vmem:[#allocation7 + $0x16] ss:$8 sm:$0x3] }
 0x569   :  { %v1578_v26 = vadd.f32 %v1577_v25, %v1378_v15  ;;  %v1579_v27 = vpop.f32.mrb[10].mxu0 }
 0x56a   :  { %v1582_v28 = vrot.slane %v1576_v24, 4  ;;  %v1594_v29 = vmul.f32 %v1576_v24, %v1576_v24  ;;  %v1580_v32 = vpop.f32.mrb[11].mxu0 }
 0x56b   :  { %v1588_v34 = vrot.slane %v1578_v26, 4  ;;  %v1595_v35 = vmul.f32 %v1578_v26, %v1578_v26 }
 0x56c   :  { %v1583_v36 = vadd.f32 %v1582_v28, %v1576_v24  ;;  %v1596_v37 = vrot.slane %v1594_v29, 4 }
 0x56d   :  { %v1589_v38 = vadd.f32 %v1588_v34, %v1578_v26  ;;  %v1602_v39 = vrot.slane %v1595_v35, 4 }
 0x56e   :  { %v1584_v42 = vrot.slane %v1583_v36, 2  ;;  %v1597_v31 = vadd.f32 %v1596_v37, %v1594_v29  ;;  %v2454_v37 = vld [vmem:[#allocation5 + $0x530] ss:$8 sps:$4 sm:$0xff]  }
 0x56f   :  { %v1590_v33 = vrot.slane %v1589_v38, 2  ;;  %v1603_v44 = vadd.f32 %v1602_v39, %v1595_v35  ;;  %v2459_v39 = vld [vmem:[#allocation5 + $0x580] ss:$8 sps:$4 sm:$0xff]  }
 0x570   :  { %v1585_v45 = vadd.f32 %v1584_v42, %v1583_v36  ;;  %v1598_v46 = vrot.slane %v1597_v31, 2  ;;  %v2460_v42 = vld [vmem:[#allocation5 + $0x590] ss:$8 sps:$4 sm:$0xff]  }
 0x571   :  { %v1591_v40 = vadd.f32 %v1590_v33, %v1589_v38  ;;  %v1604_v48 = vrot.slane %v1603_v44, 2  ;;  %v2458_v38 = vld [vmem:[#allocation5 + $0x570] ss:$8 sps:$4 sm:$0xff]   ;;  %v1692_v33 = vld [vmem:[#allocation7 + $0x17] ss:$0 sm:$0xff] }
 0x572   :  { %v1586_v50 = vrot.slane %v1585_v45, 1  ;;  %v1599_v51 = vadd.f32 %v1598_v46, %v1597_v31 }
 0x573   :  { %v1592_v52 = vrot.slane %v1591_v40, 1  ;;  %v1605_v53 = vadd.f32 %v1604_v48, %v1603_v44 }
 0x574   :  { %v1587_v54 = vadd.f32 %v1586_v50, %v1585_v45  ;;  %v1600_v55 = vrot.slane %v1599_v51, 1 }
 0x575   :  { %v1593_v56 = vadd.f32 %v1592_v52, %v1591_v40  ;;  %v1606_v57 = vrot.slane %v1605_v53, 1 }
 0x576   :  { %v1601_v58 = vadd.f32 %v1600_v55, %v1599_v51  ;;  %v1608_v59 = vmul.f32 0.125, %v1587_v54 }
 0x577   :  { %v1607_v47 = vadd.f32 %v1606_v57, %v1605_v53  ;;  %v1609_v49 = vmul.f32 0.125, %v1593_v56 }
 0x578   :  { %v1610_v61 = vmul.f32 0.125, %v1601_v58  ;;  %v1612_v63 = vmul.f32 %v1608_v59, %v1608_v59 }
 0x579   :  { %v1611_v0 = vmul.f32 0.125, %v1607_v47  ;;  %v1613_v1 = vmul.f32 %v1609_v49, %v1609_v49 }
 0x57a   :  { %v1614_v2 = vsub.f32 %v1610_v61, %v1612_v63 }
 0x57b   :  { %v1615_v3 = vsub.f32 %v1611_v0, %v1613_v1 }
 0x57c   :  { %v1616_v4 = vmax.f32 %v1614_v2, 0.0 }
 0x57d   :  { %v1617_v5 = vmax.f32 %v1615_v3, 0.0 }
 0x57e   :  { %v1618_v60 = vadd.f32 1e-05, %v1616_v4 }
 0x57f   :  { %v1619_v62 = vadd.f32 1e-05, %v1617_v5  ;;  %v1693_v5 = vld [vmem:[#allocation7 + $0x20] ss:$0 sm:$0xff] }
 0x580   :  { %2477 = vrsqrt.f32 %v1618_v60 }
 0x581   :  { %2479 = vrsqrt.f32 %v1619_v62 }
 0x58a   :  { %v2478_v6 = vpop.eup %2477 }
 0x58b   :  { %v2480_v7 = vpop.eup %2479 }
 0x58c   :  { %v1624_v8 = vcombine.low %v2478_v6, %v2480_v7  ;;  %v1694_v6 = vld [vmem:[#allocation7 + $0x21] ss:$0 sm:$0xff] }
 0x58e   :  { %v1631_v9 = vrot.slane %v1624_v8, %v2655_v30 }
 0x590   :  { %v1638_v11 = vrot.slane %v1631_v9, %v2655_v30 }
 0x592   :  { %v1640_v12 = vmul.f32 %v1638_v11, %v1335_v10 }
 0x594   :  { %v1645_v14 = vrot.slane %v1640_v12, %v2649_v41  ;;  %v1649_v16 = vrot.slane %v1640_v12, %v2651_v43 }
 0x596   :  { %v1652_v17 = vmul.f32 %v1645_v14, %v1608_v59  ;;  %v1653_v18 = vmul.f32 %v1649_v16, %v1609_v49  ;;  %v1674_v19 = vmul.f32 %v1649_v16, %v1578_v26  ;;  %v1673_v20 = vmul.f32 %v1645_v14, %v1576_v24  ;;  %v2453_v24 = vld [vmem:[#allocation5 + $0x520] ss:$8 sps:$4 sm:$0xff]  }
 0x597   :  { %v2590_v26 = vmov 0.0   ;;  %v1906_v14 = vld [vmem:[#allocation7 + $0x22] ss:$0 sm:$0xff] }
 0x598   :  { %v1656_v21 = vcombine.low %v1652_v17, %v1653_v18  ;;  %2207 = vmatprep.subr.bf16.mxu0 %v2590_v26  ;;  %2223 = vmatprep.mubr.msk.bf16.mxu0 %vm2591_vm1, %v2590_v26 }
 0x599   :  { %2208 = vmatpush3.bf16.msra.mxu0 %v2453_v24 }
 0x59a   :  { %v1663_v22 = vrot.slane %v1656_v21, %v2655_v30  ;;  %2209 = vmatprep.subr.bf16.mxu0 %v2590_v26 }
 0x59c   :  { %v1670_v15 = vrot.slane %v1663_v22, %v2655_v30  ;;  %v2457_v30 = vld [vmem:[#allocation5 + $0x560] ss:$8 sps:$4 sm:$0xff]  }
 0x59d   :  { %2210 = vmatpush3.bf16.msra.mxu0 %v2454_v37 }
 0x59e   :  { %v1672_v23 = vsub.f32 %v1337_v13, %v1670_v15  ;;  %2211 = vmatprep.subr.bf16.mxu0 %v2590_v26 }
 0x5a0   :  { %v1683_v25 = vrot.slane %v1672_v23, %v2651_v43  ;;  %v1679_v27 = vrot.slane %v1672_v23, %v2649_v41  ;;  %v2455_v43 = vld [vmem:[#allocation5 + $0x540] ss:$8 sps:$4 sm:$0xff]   ;;  %v2456_v41 = vld [vmem:[#allocation5 + $0x550] ss:$8 sps:$4 sm:$0xff]  }
 0x5a1   :  { %2212 = vmatpush3.bf16.msra.mxu0 %v2455_v43 }
 0x5a2   :  { %v1687_v28 = vadd.f32 %v1683_v25, %v1674_v19  ;;  %v1686_v29 = vadd.f32 %v1679_v27, %v1673_v20  ;;  %2213 = vmatprep.subr.bf16.mxu0 %v2590_v26 }
 0x5a4   :  { %v1689_v32 = vmax.f32 %v1687_v28, 0.0  ;;  %v1688_v34 = vmax.f32 %v1686_v29, 0.0 }
 0x5a5   :  { %2214 = vmatpush3.bf16.msra.mxu0 %v2456_v41 }
 0x5a6   :  { %v1691_v35 = vpack.c.bf16 %v1689_v32, %v1689_v32  ;;  %v1690_v36 = vpack.c.bf16 %v1688_v34, %v1688_v34  ;;  %2215 = vmatprep.subr.bf16.mxu0 %v2590_v26 }
 0x5a8   :  { %1855 = vmatprep.mubr.bf16.mxu1 %v1691_v35 }
 0x5a9   :  { %1856 = vmatmul.mubr.bf16.vlgmr.msra.gmra.mrb[8].mxu1 %v1690_v36  ;;  %2216 = vmatpush3.bf16.msra.mxu0 %v2457_v30 }
 0x5aa   :  { %2217 = vmatprep.subr.bf16.mxu0 %v2590_v26 }
 0x5ad   :  { %2218 = vmatpush3.bf16.msra.mxu0 %v2458_v38 }
 0x5ae   :  { %2219 = vmatprep.subr.bf16.mxu0 %v2590_v26 }
 0x5b1   :  { %2220 = vmatpush3.bf16.msra.mxu0 %v2459_v39 }
 0x5b2   :  { %2221 = vmatprep.subr.bf16.mxu0 %v2590_v26 }
 0x5b5   :  { %2222 = vmatpush3.bf16.msra.mxu0 %v2460_v42 }
 0x67c   :  { %v2192_v31 = vpop.f32.mrb[8].mxu1 }
 0x67d   :  { %v2193_v44 = vpop.f32.mrb[9].mxu1 }
 0x67e   :  { %v2194_v45 = vadd.f32 %v2193_v44, %v2192_v31  ;;  %v2195_v46 = vpop.f32.mrb[10].mxu1 }
 0x67f   :  { %v2196_v40 = vpop.f32.mrb[11].mxu1 }
 0x680   :  { %v1858_v48 = vadd.f32 %v2194_v45, %v1692_v33 }
 0x682   :  { %v1863_v50 = vrot.slane %v1858_v48, 4  ;;  %v1869_v51 = vmul.f32 %v1858_v48, %v1858_v48 }
 0x684   :  { %v1864_v52 = vadd.f32 %v1863_v50, %v1858_v48  ;;  %v1870_v53 = vrot.slane %v1869_v51, 4 }
 0x686   :  { %v1865_v54 = vrot.slane %v1864_v52, 2  ;;  %v1871_v55 = vadd.f32 %v1870_v53, %v1869_v51 }
 0x688   :  { %v1866_v56 = vadd.f32 %v1865_v54, %v1864_v52  ;;  %v1872_v57 = vrot.slane %v1871_v55, 2 }
 0x68a   :  { %v1867_v58 = vrot.slane %v1866_v56, 1  ;;  %v1873_v59 = vadd.f32 %v1872_v57, %v1871_v55 }
 0x68c   :  { %v1868_v47 = vadd.f32 %v1867_v58, %v1866_v56  ;;  %v1874_v49 = vrot.slane %v1873_v59, 1 }
 0x68e   :  { %v1875_v61 = vadd.f32 %v1874_v49, %v1873_v59  ;;  %v1876_v63 = vmul.f32 0.125, %v1868_v47 }
 0x690   :  { %v1877_v0 = vmul.f32 0.125, %v1875_v61  ;;  %v1878_v1 = vmul.f32 %v1876_v63, %v1876_v63 }
 0x692   :  { %v1879_v2 = vsub.f32 %v1877_v0, %v1878_v1 }
 0x694   :  { %v1880_v3 = vmax.f32 %v1879_v2, 0.0 }
 0x696   :  { %v1881_v4 = vadd.f32 1e-05, %v1880_v3 }
 0x698   :  { %2481 = vrsqrt.f32 %v1881_v4 }
 0x6a2   :  { %v2482_v60 = vpop.eup %2481 }
 0x6a3   :  { %v1883_v62 = vmul.f32 %v2482_v60, %v1693_v5 }
 0x6a5   :  { %v1884_v7 = vmul.f32 %v1883_v62, %v1876_v63  ;;  %v1886_v9 = vmul.f32 %v1883_v62, %v1858_v48 }
 0x6a7   :  { %v1885_v8 = vsub.f32 %v1694_v6, %v1884_v7 }
 0x6a9   :  { %v1887_v10 = vadd.f32 %v1886_v9, %v1885_v8 }
 0x6ab   :  { %v1888_v11 = vmax.f32 %v1887_v10, 0.0 }
 0x6ad   :  { %v1889_v12 = vpack.c.bf16 %v1888_v11, %v1888_v11 }
 0x6af   :  { %2224 = vmatmul.mubr.bf16.vlgmr.msra.gmra.mrb[12].mxu0 %v1889_v12 }
 0x782   :  { %v1989_v16 = vpop.f32.mrb[12].mxu0 }
 0x783   :  { %v1990_v17 = vadd.f32 %v1989_v16, %v1906_v14  ;;  %v2225_v18 = vpop.f32.mrb[13].mxu0 }
 0x784   :  { %v1992_v19 = vpop.f32.mrb[14].mxu0 }
 0x785   :  { %v2175_v20 = vmul.f32 -1.442695, %v1990_v17  ;;  %v2226_v21 = vpop.f32.mrb[15].mxu0 }
 0x787   :  { %2483 = vpow2.f32 %v2175_v20 }
 0x791   :  { %v2484_v22 = vpop.eup %2483 }
 0x792   :  { %v1998_v13 = vadd.f32 1.0, %v2484_v22 }
 0x794   :  { %2485 = vrcp.f32 %v1998_v13 }
 0x79e   :  { %v2486_v15 = vpop.eup %2485 }
 0x79f   :  { %2001 = vst [vmem:[#allocation8] sm:$0xff] %v2486_v15 }
 0x7a0   :  { %2564 = shalt.err (!%p2561_p0)
}
 0x7a1   :  { %s2565_s27 = scalar_lea.hbm %s2720_s3, 128 }
 0x7a2   :  { %p2566_p1 = scmp.ne.s32.totalorder %s2720_s3, %s2565_s27  ;;  %p2569_p2 = scmp.lt.u32.totalorder %s2565_s27, %s2720_s3 }
 0x7a4   :  { %p2571_p3 = pnand %p2569_p2, %p2566_p1 }
 0x7a6   :  { %2574 = shalt.err (!%p2571_p3)
}
 0x7a7   :  { %2011 = dma.vmem_to_hbm [thread:$0]  %s2009_s23, 128, %s2720_s3, [#allocation4]  }
 0x7a8   :  { %2579 = dma.done.wait [#allocation4], 128  }
 0x7a9   :  { %2580 = vsyncadd [#allocation4], 4294967168 }
 0x7aa   :  { %2015 = vsyncpa [#allocation3], 1 }
 0x7ab   :  { %2016 = vsyncpa [#allocation6], 1 }
 0x7ac   :  { %2017 = vsyncpa [#allocation4], 1 }

</bundles_post_ra>
